<compile_context>
chip_gen: v7x
topology: tpu7x:2x2x1
jax: 0.10.0
libtpu: 0.0.40
codegen_flags: <defaults>
</compile_context>

<pallas_src>
import functools
import math

import jax
import jax.numpy as jnp
import numpy as np
from jax.experimental import pallas as pl
from jax.experimental.pallas import tpu as pltpu

# dot_general dimension numbers for A @ B^T (contract the last dim of both operands).
_NT = (((1,), (1,)), ((), ()))


def _softplus(t):
    # numerically stable softplus (matches F.softplus for the value range used here)
    return jnp.maximum(t, 0.0) + jnp.log(1.0 + jnp.exp(-jnp.abs(t)))


def _mioa_kernel(P, n, d_in, block_b, unbed,
                 xh_ref, xt_ref, wd_ref, wdb_ref, wbc_ref, bdt_ref,
                 alogT_ref, dvec_ref, whead_ref, out_ref, y_scr):
    f32 = jnp.float32
    rows = block_b * P

    xh = xh_ref[...]        # (rows, d_in)   u[:, :P]        rows folded as (batch, step)
    xt = xt_ref[...]        # (rows, d_in)   flip(u,1)[:, :P]

    # --- fused low-rank delta path (Wd / Wdb precomputed host-side) -----------------
    delta = _softplus(jnp.dot(xh, wd_ref[...], preferred_element_type=f32) + bdt_ref[...])
    delta_b = _softplus(jnp.dot(xt, wdb_ref[...], preferred_element_type=f32) + bdt_ref[...])

    # --- B_f, B_b, C directly in (n, rows) orientation: one A@B^T matmul ------------
    bct = jax.lax.dot_general(wbc_ref[...], xh, _NT, preferred_element_type=f32)  # (3n, rows)
    BfT = bct[0 * n:1 * n, :]
    BbT = bct[1 * n:2 * n, :]
    CT = bct[2 * n:3 * n, :]

    AT = -jnp.exp(alogT_ref[...].astype(f32))        # (n, d_in)

    du = delta * xh                                   # (rows, d_in)
    dub = delta_b * xt

    # hoist the exp: a single EUP launch covering every (batch, step) pair of the block
    dA_all = jnp.exp(jnp.concatenate(
        [delta[r:r + 1, :] * AT for r in range(rows)], axis=0))       # (rows*n, d_in)

    # --- selective scan: serial over P steps per batch; recurrence is pure VPU FMAs --
    for k in range(block_b):
        h = jnp.zeros((n, d_in), dtype=f32)
        for i in range(P):
            r = k * P + i
            dA = dA_all[r * n:(r + 1) * n, :]                  # (n, d_in)
            dBfu = du[r:r + 1, :] * BfT[:, r:r + 1]            # (n, d_in)
            dBbu = dub[r:r + 1, :] * BbT[:, r:r + 1]           # (n, d_in)
            h = dA * h + dBfu + dBbu
            y_scr[r:r + 1, :] = jnp.sum(h * CT[:, r:r + 1], axis=0, keepdims=True)

    # skip (D) term:  y + u[:P]*D + flip(u)[:P]*D   (Df == Db == D)
    y = y_scr[...] + (xh + xt) * dvec_ref[...]                 # (rows, d_in)

    # head: output features land on sublanes so the store stays lane-dense (1, rows)
    yoT = jax.lax.dot_general(whead_ref[...], y, _NT, preferred_element_type=f32)
    if unbed == "linear":
        out = yoT                       # whead already fuses out_proj @ adaptive -> (1, rows)
    elif unbed == "max":
        out = jnp.max(yoT, axis=0, keepdims=True)
    else:  # "mean"
        out = jnp.mean(yoT, axis=0, keepdims=True)

    out_ref[0] = out


def _pick_block_b(b, P):
    """Largest batch block (<=8) that divides b and keeps the folded row extent
    (block_b * P) sublane-aligned; falls back to a single block over the whole batch."""
    for cand in range(min(b, 8), 0, -1):
        if b % cand == 0 and (cand == b or (cand * P) % 8 == 0):
            return cand
    return b


def init_params(key, d_model, d_state):
    dt_rank = math.ceil(d_model / 16)
    ks = jax.random.split(key, 6)
    s = 0.1
    params = {
        "x_proj_w": jax.random.normal(ks[0], (dt_rank + 3 * d_state, d_model), jnp.float32) * s,
        "xb_proj_w": jax.random.normal(ks[1], (dt_rank, d_model), jnp.float32) * s,
        "dt_proj_w": jax.random.normal(ks[2], (d_model, dt_rank), jnp.float32) * s,
        "dt_proj_b": jax.random.normal(ks[3], (d_model,), jnp.float32) * s,
        "A_log": jnp.log(jnp.broadcast_to(
            jnp.arange(1, d_state + 1, dtype=jnp.float32), (d_model, d_state))),
        "D": jnp.ones((d_model,), jnp.float32),
        "out_proj_w": jax.random.normal(ks[4], (d_model, d_model), jnp.float32) * s,
        "adaptive_w": jax.random.normal(ks[5], (1, d_model), jnp.float32) * s,
    }
    return params


def mioa_forward(x, params, *, P, unbed="linear", block_b=None):
    """Pallas implementation of MioA.forward.  Returns (y, x) with y of shape (b, P)
    (== torch `.squeeze()` for b > 1, P > 1)."""
    b, l, d_model = x.shape
    dt_rank = params["xb_proj_w"].shape[0]
    n = params["A_log"].shape[1]
    d_in = d_model                                     # expand == 1
    assert P <= l, "the scan only consumes the first P positions"

    if block_b is None:
        block_b = _pick_block_b(b, P)
    assert b % block_b == 0
    num_blocks = b // block_b
    rows_blk = block_b * P

    # ---- host-side glue: O(P) slices and O(d^2) weight fusions only --------------------
    xh = x[:, :P, :].reshape(b * P, d_in)                        # u[:, :P]
    xt = jnp.flip(x[:, l - P:, :], axis=1).reshape(b * P, d_in)  # flip(u,1)[:, :P]

    wdt = params["dt_proj_w"].T                                  # (r, d_in)
    wd = params["x_proj_w"][:dt_rank].T @ wdt                    # (d_in, d_in)  fused fwd delta
    wdb = params["xb_proj_w"].T @ wdt                            # (d_in, d_in)  fused bwd delta
    wbc = params["x_proj_w"][dt_rank:dt_rank + 3 * n]            # (3n, d_in)    [Bf; Bb; C]
    bdt = params["dt_proj_b"].reshape(1, d_in)
    alogT = params["A_log"].T                                    # (n, d_in)
    dvec = params["D"].reshape(1, d_in)
    if unbed == "linear":
        whead = params["adaptive_w"] @ params["out_proj_w"]      # (1, d_in) fused head
    else:
        whead = params["out_proj_w"]                             # (d_model, d_in)

    def full(w):
        # constant index_map: Pallas DMAs the weight once and never re-fetches it.
        return pl.BlockSpec(w.shape, lambda j: (0,) * w.ndim)

    in_specs = [
        pl.BlockSpec((rows_blk, d_in), lambda j: (j, 0)),        # xh rows of this batch block
        pl.BlockSpec((rows_blk, d_in), lambda j: (j, 0)),        # xt rows of this batch block
        full(wd), full(wdb), full(wbc), full(bdt),
        full(alogT), full(dvec), full(whead),
    ]

    out = pl.pallas_call(
        functools.partial(_mioa_kernel, P, n, d_in, block_b, unbed),
        out_shape=jax.ShapeDtypeStruct((num_blocks, 1, rows_blk), jnp.float32),
        grid_spec=pltpu.PrefetchScalarGridSpec(
            num_scalar_prefetch=0,
            grid=(num_blocks,),
            in_specs=in_specs,
            out_specs=pl.BlockSpec((1, 1, rows_blk), lambda j: (j, 0, 0)),
            scratch_shapes=[pltpu.VMEM((rows_blk, d_in), jnp.float32)],
        ),
        compiler_params=pltpu.CompilerParams(dimension_semantics=("parallel",)),
    )(xh, xt, wd, wdb, wbc, bdt, alogT, dvec, whead)

    y = out.reshape(b, P)   # free host-side reshape; == torch .squeeze() for b > 1, P > 1
    return y, x


# --------------------------- pure-JAX reference (for checking) ---------------------------
def mioa_reference(x, params, *, P, unbed="linear"):
    b, l, d = x.shape
    dt_rank = params["xb_proj_w"].shape[0]
    n = params["A_log"].shape[1]
    A = -jnp.exp(params["A_log"])
    Dv = params["D"]
    xf = jnp.flip(x, axis=1)

    x_dbl = x @ params["x_proj_w"].T
    delta_raw = x_dbl[..., :dt_rank]
    Bf = x_dbl[..., dt_rank:dt_rank + n]
    Bb = x_dbl[..., dt_rank + n:dt_rank + 2 * n]
    C = x_dbl[..., dt_rank + 2 * n:dt_rank + 3 * n]
    db_raw = xf @ params["xb_proj_w"].T

    delta = _softplus(delta_raw @ params["dt_proj_w"].T + params["dt_proj_b"])
    delta_b = _softplus(db_raw @ params["dt_proj_w"].T + params["dt_proj_b"])

    deltaA = jnp.exp(delta[..., None] * A[None, None])
    dBfu = delta[..., None] * Bf[:, :, None, :] * x[..., None]
    dBbu = delta_b[..., None] * Bb[:, :, None, :] * xf[..., None]

    h = jnp.zeros((b, d, n), jnp.float32)
    ys = []
    for i in range(P):
        h = deltaA[:, i] * h + dBfu[:, i] + dBbu[:, i]
        ys.append(jnp.einsum("bdn,bn->bd", h, C[:, i]))
    y = jnp.stack(ys, axis=1)
    y = y + x[:, :P] * Dv + xf[:, :P] * Dv
    yo = y @ params["out_proj_w"].T
    if unbed == "linear":
        out = (yo @ params["adaptive_w"].T)[..., 0]
    elif unbed == "max":
        out = yo.max(-1)
    else:
        out = yo.mean(-1)
    return out, x


if __name__ == "__main__":
    key = jax.random.PRNGKey(0)
    b, l, d_model, d_state, P = 2, 16, 32, 8, 8
    # d_conv / L are unused in the module's forward pass.
    kx, kp = jax.random.split(key)
    x = jax.random.normal(kx, (b, l, d_model), jnp.float32)
    params = init_params(kp, d_model, d_state)

    for unbed in ("linear", "max", "mean"):
        y, x6 = mioa_forward(x, params, P=P, unbed=unbed)
        jax.block_until_ready(y)
        y_ref, _ = mioa_reference(x, params, P=P, unbed=unbed)
        np.testing.assert_allclose(np.asarray(y), np.asarray(y_ref), rtol=2e-2, atol=2e-2)
        assert y.shape == (b, P)

    print("KERNEL_OK")
</pallas_src>

<mosaic_0001>
module attributes {stable_mosaic.version = 11 : i64} {
  func.func @_mioa_kernel(%arg0: i32, %arg1: memref<16x32xf32, #tpu.memory_space<vmem>>, %arg2: memref<16x32xf32, #tpu.memory_space<vmem>>, %arg3: memref<32x32xf32, #tpu.memory_space<vmem>>, %arg4: memref<32x32xf32, #tpu.memory_space<vmem>>, %arg5: memref<24x32xf32, #tpu.memory_space<vmem>>, %arg6: memref<1x32xf32, #tpu.memory_space<vmem>>, %arg7: memref<8x32xf32, #tpu.memory_space<vmem>>, %arg8: memref<1x32xf32, #tpu.memory_space<vmem>>, %arg9: memref<1x32xf32, #tpu.memory_space<vmem>>, %arg10: memref<1x1x16xf32, #tpu.memory_space<vmem>>, %arg11: memref<16x32xf32, #tpu.memory_space<vmem>>) attributes {dimension_semantics = [#tpu.dimension_semantics<parallel>], iteration_bounds = array<i64: 1>, scalar_prefetch = 0 : i64, scratch_operands = 1 : i64, tpu.core_type = #tpu.core_type<tc>, window_params = [{transform_indices = @transform_0, window_bounds = array<i64: 16, 32>}, {transform_indices = @transform_1, window_bounds = array<i64: 16, 32>}, {pipeline_mode = #tpu.pipeline_mode<synchronous>, transform_indices = @transform_2, window_bounds = array<i64: 32, 32>}, {pipeline_mode = #tpu.pipeline_mode<synchronous>, transform_indices = @transform_3, window_bounds = array<i64: 32, 32>}, {pipeline_mode = #tpu.pipeline_mode<synchronous>, transform_indices = @transform_4, window_bounds = array<i64: 24, 32>}, {pipeline_mode = #tpu.pipeline_mode<synchronous>, transform_indices = @transform_5, window_bounds = array<i64: 1, 32>}, {pipeline_mode = #tpu.pipeline_mode<synchronous>, transform_indices = @transform_6, window_bounds = array<i64: 8, 32>}, {pipeline_mode = #tpu.pipeline_mode<synchronous>, transform_indices = @transform_7, window_bounds = array<i64: 1, 32>}, {pipeline_mode = #tpu.pipeline_mode<synchronous>, transform_indices = @transform_8, window_bounds = array<i64: 1, 32>}, {transform_indices = @transform_9, window_bounds = array<i64: 1, 1, 16>}]} {
    %c0 = arith.constant 0 : index
    %c0_0 = arith.constant 0 : index
    %0 = vector.load %arg1[%c0, %c0_0] : memref<16x32xf32, #tpu.memory_space<vmem>>, vector<16x32xf32>
    %c0_1 = arith.constant 0 : index
    %c0_2 = arith.constant 0 : index
    %1 = vector.load %arg2[%c0_1, %c0_2] : memref<16x32xf32, #tpu.memory_space<vmem>>, vector<16x32xf32>
    %c0_3 = arith.constant 0 : index
    %c0_4 = arith.constant 0 : index
    %2 = vector.load %arg3[%c0_3, %c0_4] : memref<32x32xf32, #tpu.memory_space<vmem>>, vector<32x32xf32>
    %cst = arith.constant dense<0.000000e+00> : vector<16x32xf32>
    %3 = tpu.matmul %0, %2, %cst {dimension_numbers = #tpu.dot_dimension_numbers<[1], [0], [0], [1], [0, 0, 1, 1], [], []>} : vector<16x32xf32>, vector<32x32xf32>, vector<16x32xf32> -> vector<16x32xf32>
    %c0_5 = arith.constant 0 : index
    %c0_6 = arith.constant 0 : index
    %4 = vector.load %arg6[%c0_5, %c0_6] : memref<1x32xf32, #tpu.memory_space<vmem>>, vector<1x32xf32>
    %5 = vector.broadcast %4 : vector<1x32xf32> to vector<16x32xf32>
    %6 = arith.addf %3, %5 : vector<16x32xf32>
    %cst_7 = arith.constant 0.000000e+00 : f32
    %7 = vector.broadcast %cst_7 : f32 to vector<16x32xf32>
    %8 = arith.maximumf %6, %7 : vector<16x32xf32>
    %9 = math.absf %6 : vector<16x32xf32>
    %cst_8 = arith.constant 0.000000e+00 : f32
    %10 = vector.broadcast %cst_8 : f32 to vector<16x32xf32>
    %11 = arith.subf %10, %9 : vector<16x32xf32>
    %12 = math.exp %11 : vector<16x32xf32>
    %cst_9 = arith.constant 1.000000e+00 : f32
    %13 = vector.broadcast %cst_9 : f32 to vector<16x32xf32>
    %14 = arith.addf %13, %12 : vector<16x32xf32>
    %15 = math.log %14 : vector<16x32xf32>
    %16 = arith.addf %8, %15 : vector<16x32xf32>
    %c0_10 = arith.constant 0 : index
    %c0_11 = arith.constant 0 : index
    %17 = vector.load %arg4[%c0_10, %c0_11] : memref<32x32xf32, #tpu.memory_space<vmem>>, vector<32x32xf32>
    %cst_12 = arith.constant dense<0.000000e+00> : vector<16x32xf32>
    %18 = tpu.matmul %1, %17, %cst_12 {dimension_numbers = #tpu.dot_dimension_numbers<[1], [0], [0], [1], [0, 0, 1, 1], [], []>} : vector<16x32xf32>, vector<32x32xf32>, vector<16x32xf32> -> vector<16x32xf32>
    %c0_13 = arith.constant 0 : index
    %c0_14 = arith.constant 0 : index
    %19 = vector.load %arg6[%c0_13, %c0_14] : memref<1x32xf32, #tpu.memory_space<vmem>>, vector<1x32xf32>
    %20 = vector.broadcast %19 : vector<1x32xf32> to vector<16x32xf32>
    %21 = arith.addf %18, %20 : vector<16x32xf32>
    %cst_15 = arith.constant 0.000000e+00 : f32
    %22 = vector.broadcast %cst_15 : f32 to vector<16x32xf32>
    %23 = arith.maximumf %21, %22 : vector<16x32xf32>
    %24 = math.absf %21 : vector<16x32xf32>
    %cst_16 = arith.constant 0.000000e+00 : f32
    %25 = vector.broadcast %cst_16 : f32 to vector<16x32xf32>
    %26 = arith.subf %25, %24 : vector<16x32xf32>
    %27 = math.exp %26 : vector<16x32xf32>
    %cst_17 = arith.constant 1.000000e+00 : f32
    %28 = vector.broadcast %cst_17 : f32 to vector<16x32xf32>
    %29 = arith.addf %28, %27 : vector<16x32xf32>
    %30 = math.log %29 : vector<16x32xf32>
    %31 = arith.addf %23, %30 : vector<16x32xf32>
    %c0_18 = arith.constant 0 : index
    %c0_19 = arith.constant 0 : index
    %32 = vector.load %arg5[%c0_18, %c0_19] : memref<24x32xf32, #tpu.memory_space<vmem>>, vector<24x32xf32>
    %cst_20 = arith.constant dense<0.000000e+00> : vector<24x16xf32>
    %33 = tpu.matmul %32, %0, %cst_20 {dimension_numbers = #tpu.dot_dimension_numbers<[1], [1], [0], [0], [0, 0, 1, 0], [], []>} : vector<24x32xf32>, vector<16x32xf32>, vector<24x16xf32> -> vector<24x16xf32>
    %34 = vector.extract_strided_slice %33 {offsets = [0, 0], sizes = [8, 16], strides = [1, 1]} : vector<24x16xf32> to vector<8x16xf32>
    %35 = vector.extract_strided_slice %33 {offsets = [8, 0], sizes = [8, 16], strides = [1, 1]} : vector<24x16xf32> to vector<8x16xf32>
    %36 = vector.extract_strided_slice %33 {offsets = [16, 0], sizes = [8, 16], strides = [1, 1]} : vector<24x16xf32> to vector<8x16xf32>
    %c0_21 = arith.constant 0 : index
    %c0_22 = arith.constant 0 : index
    %37 = vector.load %arg7[%c0_21, %c0_22] : memref<8x32xf32, #tpu.memory_space<vmem>>, vector<8x32xf32>
    %38 = math.exp %37 : vector<8x32xf32>
    %cst_23 = arith.constant 0.000000e+00 : f32
    %39 = vector.broadcast %cst_23 : f32 to vector<8x32xf32>
    %40 = arith.subf %39, %38 : vector<8x32xf32>
    %41 = arith.mulf %16, %0 : vector<16x32xf32>
    %42 = arith.mulf %31, %1 : vector<16x32xf32>
    %43 = vector.extract_strided_slice %16 {offsets = [0, 0], sizes = [1, 32], strides = [1, 1]} : vector<16x32xf32> to vector<1x32xf32>
    %44 = vector.broadcast %43 : vector<1x32xf32> to vector<8x32xf32>
    %45 = arith.mulf %44, %40 : vector<8x32xf32>
    %46 = vector.extract_strided_slice %16 {offsets = [1, 0], sizes = [1, 32], strides = [1, 1]} : vector<16x32xf32> to vector<1x32xf32>
    %47 = vector.broadcast %46 : vector<1x32xf32> to vector<8x32xf32>
    %48 = arith.mulf %47, %40 : vector<8x32xf32>
    %49 = vector.extract_strided_slice %16 {offsets = [2, 0], sizes = [1, 32], strides = [1, 1]} : vector<16x32xf32> to vector<1x32xf32>
    %50 = vector.broadcast %49 : vector<1x32xf32> to vector<8x32xf32>
    %51 = arith.mulf %50, %40 : vector<8x32xf32>
    %52 = vector.extract_strided_slice %16 {offsets = [3, 0], sizes = [1, 32], strides = [1, 1]} : vector<16x32xf32> to vector<1x32xf32>
    %53 = vector.broadcast %52 : vector<1x32xf32> to vector<8x32xf32>
    %54 = arith.mulf %53, %40 : vector<8x32xf32>
    %55 = vector.extract_strided_slice %16 {offsets = [4, 0], sizes = [1, 32], strides = [1, 1]} : vector<16x32xf32> to vector<1x32xf32>
    %56 = vector.broadcast %55 : vector<1x32xf32> to vector<8x32xf32>
    %57 = arith.mulf %56, %40 : vector<8x32xf32>
    %58 = vector.extract_strided_slice %16 {offsets = [5, 0], sizes = [1, 32], strides = [1, 1]} : vector<16x32xf32> to vector<1x32xf32>
    %59 = vector.broadcast %58 : vector<1x32xf32> to vector<8x32xf32>
    %60 = arith.mulf %59, %40 : vector<8x32xf32>
    %61 = vector.extract_strided_slice %16 {offsets = [6, 0], sizes = [1, 32], strides = [1, 1]} : vector<16x32xf32> to vector<1x32xf32>
    %62 = vector.broadcast %61 : vector<1x32xf32> to vector<8x32xf32>
    %63 = arith.mulf %62, %40 : vector<8x32xf32>
    %64 = vector.extract_strided_slice %16 {offsets = [7, 0], sizes = [1, 32], strides = [1, 1]} : vector<16x32xf32> to vector<1x32xf32>
    %65 = vector.broadcast %64 : vector<1x32xf32> to vector<8x32xf32>
    %66 = arith.mulf %65, %40 : vector<8x32xf32>
    %67 = vector.extract_strided_slice %16 {offsets = [8, 0], sizes = [1, 32], strides = [1, 1]} : vector<16x32xf32> to vector<1x32xf32>
    %68 = vector.broadcast %67 : vector<1x32xf32> to vector<8x32xf32>
    %69 = arith.mulf %68, %40 : vector<8x32xf32>
    %70 = vector.extract_strided_slice %16 {offsets = [9, 0], sizes = [1, 32], strides = [1, 1]} : vector<16x32xf32> to vector<1x32xf32>
    %71 = vector.broadcast %70 : vector<1x32xf32> to vector<8x32xf32>
    %72 = arith.mulf %71, %40 : vector<8x32xf32>
    %73 = vector.extract_strided_slice %16 {offsets = [10, 0], sizes = [1, 32], strides = [1, 1]} : vector<16x32xf32> to vector<1x32xf32>
    %74 = vector.broadcast %73 : vector<1x32xf32> to vector<8x32xf32>
    %75 = arith.mulf %74, %40 : vector<8x32xf32>
    %76 = vector.extract_strided_slice %16 {offsets = [11, 0], sizes = [1, 32], strides = [1, 1]} : vector<16x32xf32> to vector<1x32xf32>
    %77 = vector.broadcast %76 : vector<1x32xf32> to vector<8x32xf32>
    %78 = arith.mulf %77, %40 : vector<8x32xf32>
    %79 = vector.extract_strided_slice %16 {offsets = [12, 0], sizes = [1, 32], strides = [1, 1]} : vector<16x32xf32> to vector<1x32xf32>
    %80 = vector.broadcast %79 : vector<1x32xf32> to vector<8x32xf32>
    %81 = arith.mulf %80, %40 : vector<8x32xf32>
    %82 = vector.extract_strided_slice %16 {offsets = [13, 0], sizes = [1, 32], strides = [1, 1]} : vector<16x32xf32> to vector<1x32xf32>
    %83 = vector.broadcast %82 : vector<1x32xf32> to vector<8x32xf32>
    %84 = arith.mulf %83, %40 : vector<8x32xf32>
    %85 = vector.extract_strided_slice %16 {offsets = [14, 0], sizes = [1, 32], strides = [1, 1]} : vector<16x32xf32> to vector<1x32xf32>
    %86 = vector.broadcast %85 : vector<1x32xf32> to vector<8x32xf32>
    %87 = arith.mulf %86, %40 : vector<8x32xf32>
    %88 = vector.extract_strided_slice %16 {offsets = [15, 0], sizes = [1, 32], strides = [1, 1]} : vector<16x32xf32> to vector<1x32xf32>
    %89 = vector.broadcast %88 : vector<1x32xf32> to vector<8x32xf32>
    %90 = arith.mulf %89, %40 : vector<8x32xf32>
    %91 = tpu.concatenate %45, %48, %51, %54, %57, %60, %63, %66, %69, %72, %75, %78, %81, %84, %87, %90 in 0 : vector<8x32xf32>, vector<8x32xf32>, vector<8x32xf32>, vector<8x32xf32>, vector<8x32xf32>, vector<8x32xf32>, vector<8x32xf32>, vector<8x32xf32>, vector<8x32xf32>, vector<8x32xf32>, vector<8x32xf32>, vector<8x32xf32>, vector<8x32xf32>, vector<8x32xf32>, vector<8x32xf32>, vector<8x32xf32> -> vector<128x32xf32>
    %92 = math.exp %91 : vector<128x32xf32>
    %cst_24 = arith.constant 0.000000e+00 : f32
    %93 = vector.broadcast %cst_24 : f32 to vector<8x32xf32>
    %94 = vector.extract_strided_slice %92 {offsets = [0, 0], sizes = [8, 32], strides = [1, 1]} : vector<128x32xf32> to vector<8x32xf32>
    %95 = vector.extract_strided_slice %41 {offsets = [0, 0], sizes = [1, 32], strides = [1, 1]} : vector<16x32xf32> to vector<1x32xf32>
    %96 = vector.extract_strided_slice %34 {offsets = [0, 0], sizes = [8, 1], strides = [1, 1]} : vector<8x16xf32> to vector<8x1xf32>
    %97 = vector.broadcast %95 : vector<1x32xf32> to vector<8x32xf32>
    %98 = vector.broadcast %96 : vector<8x1xf32> to vector<8x32xf32>
    %99 = arith.mulf %97, %98 : vector<8x32xf32>
    %100 = vector.extract_strided_slice %42 {offsets = [0, 0], sizes = [1, 32], strides = [1, 1]} : vector<16x32xf32> to vector<1x32xf32>
    %101 = vector.extract_strided_slice %35 {offsets = [0, 0], sizes = [8, 1], strides = [1, 1]} : vector<8x16xf32> to vector<8x1xf32>
    %102 = vector.broadcast %100 : vector<1x32xf32> to vector<8x32xf32>
    %103 = vector.broadcast %101 : vector<8x1xf32> to vector<8x32xf32>
    %104 = arith.mulf %102, %103 : vector<8x32xf32>
    %105 = arith.mulf %94, %93 : vector<8x32xf32>
    %106 = arith.addf %105, %99 : vector<8x32xf32>
    %107 = arith.addf %106, %104 : vector<8x32xf32>
    %108 = vector.extract_strided_slice %36 {offsets = [0, 0], sizes = [8, 1], strides = [1, 1]} : vector<8x16xf32> to vector<8x1xf32>
    %109 = vector.broadcast %108 : vector<8x1xf32> to vector<8x32xf32>
    %110 = arith.mulf %107, %109 : vector<8x32xf32>
    %cst_25 = arith.constant dense<0.000000e+00> : vector<32xf32>
    %111 = vector.multi_reduction <add>, %110, %cst_25 [0] : vector<8x32xf32> to vector<32xf32>
    %112 = vector.shape_cast %111 : vector<32xf32> to vector<1x32xf32>
    %c0_26 = arith.constant 0 : index
    %c0_27 = arith.constant 0 : index
    %113 = vector.load %arg11[%c0_26, %c0_27] : memref<16x32xf32, #tpu.memory_space<vmem>>, vector<1x32xf32>
    tpu.vector_store %arg11[%c0_26, %c0_27], %112 {strides = array<i32>} : memref<16x32xf32, #tpu.memory_space<vmem>>, vector<1x32xf32>,
    %114 = vector.extract_strided_slice %92 {offsets = [8, 0], sizes = [8, 32], strides = [1, 1]} : vector<128x32xf32> to vector<8x32xf32>
    %115 = vector.extract_strided_slice %41 {offsets = [1, 0], sizes = [1, 32], strides = [1, 1]} : vector<16x32xf32> to vector<1x32xf32>
    %116 = vector.extract_strided_slice %34 {offsets = [0, 1], sizes = [8, 1], strides = [1, 1]} : vector<8x16xf32> to vector<8x1xf32>
    %117 = vector.broadcast %115 : vector<1x32xf32> to vector<8x32xf32>
    %118 = vector.broadcast %116 : vector<8x1xf32> to vector<8x32xf32>
    %119 = arith.mulf %117, %118 : vector<8x32xf32>
    %120 = vector.extract_strided_slice %42 {offsets = [1, 0], sizes = [1, 32], strides = [1, 1]} : vector<16x32xf32> to vector<1x32xf32>
    %121 = vector.extract_strided_slice %35 {offsets = [0, 1], sizes = [8, 1], strides = [1, 1]} : vector<8x16xf32> to vector<8x1xf32>
    %122 = vector.broadcast %120 : vector<1x32xf32> to vector<8x32xf32>
    %123 = vector.broadcast %121 : vector<8x1xf32> to vector<8x32xf32>
    %124 = arith.mulf %122, %123 : vector<8x32xf32>
    %125 = arith.mulf %114, %107 : vector<8x32xf32>
    %126 = arith.addf %125, %119 : vector<8x32xf32>
    %127 = arith.addf %126, %124 : vector<8x32xf32>
    %128 = vector.extract_strided_slice %36 {offsets = [0, 1], sizes = [8, 1], strides = [1, 1]} : vector<8x16xf32> to vector<8x1xf32>
    %129 = vector.broadcast %128 : vector<8x1xf32> to vector<8x32xf32>
    %130 = arith.mulf %127, %129 : vector<8x32xf32>
    %cst_28 = arith.constant dense<0.000000e+00> : vector<32xf32>
    %131 = vector.multi_reduction <add>, %130, %cst_28 [0] : vector<8x32xf32> to vector<32xf32>
    %132 = vector.shape_cast %131 : vector<32xf32> to vector<1x32xf32>
    %c1 = arith.constant 1 : index
    %c0_29 = arith.constant 0 : index
    %133 = vector.load %arg11[%c1, %c0_29] : memref<16x32xf32, #tpu.memory_space<vmem>>, vector<1x32xf32>
    tpu.vector_store %arg11[%c1, %c0_29], %132 {strides = array<i32>} : memref<16x32xf32, #tpu.memory_space<vmem>>, vector<1x32xf32>,
    %134 = vector.extract_strided_slice %92 {offsets = [16, 0], sizes = [8, 32], strides = [1, 1]} : vector<128x32xf32> to vector<8x32xf32>
    %135 = vector.extract_strided_slice %41 {offsets = [2, 0], sizes = [1, 32], strides = [1, 1]} : vector<16x32xf32> to vector<1x32xf32>
    %136 = vector.extract_strided_slice %34 {offsets = [0, 2], sizes = [8, 1], strides = [1, 1]} : vector<8x16xf32> to vector<8x1xf32>
    %137 = vector.broadcast %135 : vector<1x32xf32> to vector<8x32xf32>
    %138 = vector.broadcast %136 : vector<8x1xf32> to vector<8x32xf32>
    %139 = arith.mulf %137, %138 : vector<8x32xf32>
    %140 = vector.extract_strided_slice %42 {offsets = [2, 0], sizes = [1, 32], strides = [1, 1]} : vector<16x32xf32> to vector<1x32xf32>
    %141 = vector.extract_strided_slice %35 {offsets = [0, 2], sizes = [8, 1], strides = [1, 1]} : vector<8x16xf32> to vector<8x1xf32>
    %142 = vector.broadcast %140 : vector<1x32xf32> to vector<8x32xf32>
    %143 = vector.broadcast %141 : vector<8x1xf32> to vector<8x32xf32>
    %144 = arith.mulf %142, %143 : vector<8x32xf32>
    %145 = arith.mulf %134, %127 : vector<8x32xf32>
    %146 = arith.addf %145, %139 : vector<8x32xf32>
    %147 = arith.addf %146, %144 : vector<8x32xf32>
    %148 = vector.extract_strided_slice %36 {offsets = [0, 2], sizes = [8, 1], strides = [1, 1]} : vector<8x16xf32> to vector<8x1xf32>
    %149 = vector.broadcast %148 : vector<8x1xf32> to vector<8x32xf32>
    %150 = arith.mulf %147, %149 : vector<8x32xf32>
    %cst_30 = arith.constant dense<0.000000e+00> : vector<32xf32>
    %151 = vector.multi_reduction <add>, %150, %cst_30 [0] : vector<8x32xf32> to vector<32xf32>
    %152 = vector.shape_cast %151 : vector<32xf32> to vector<1x32xf32>
    %c2 = arith.constant 2 : index
    %c0_31 = arith.constant 0 : index
    %153 = vector.load %arg11[%c2, %c0_31] : memref<16x32xf32, #tpu.memory_space<vmem>>, vector<1x32xf32>
    tpu.vector_store %arg11[%c2, %c0_31], %152 {strides = array<i32>} : memref<16x32xf32, #tpu.memory_space<vmem>>, vector<1x32xf32>,
    %154 = vector.extract_strided_slice %92 {offsets = [24, 0], sizes = [8, 32], strides = [1, 1]} : vector<128x32xf32> to vector<8x32xf32>
    %155 = vector.extract_strided_slice %41 {offsets = [3, 0], sizes = [1, 32], strides = [1, 1]} : vector<16x32xf32> to vector<1x32xf32>
    %156 = vector.extract_strided_slice %34 {offsets = [0, 3], sizes = [8, 1], strides = [1, 1]} : vector<8x16xf32> to vector<8x1xf32>
    %157 = vector.broadcast %155 : vector<1x32xf32> to vector<8x32xf32>
    %158 = vector.broadcast %156 : vector<8x1xf32> to vector<8x32xf32>
    %159 = arith.mulf %157, %158 : vector<8x32xf32>
    %160 = vector.extract_strided_slice %42 {offsets = [3, 0], sizes = [1, 32], strides = [1, 1]} : vector<16x32xf32> to vector<1x32xf32>
    %161 = vector.extract_strided_slice %35 {offsets = [0, 3], sizes = [8, 1], strides = [1, 1]} : vector<8x16xf32> to vector<8x1xf32>
    %162 = vector.broadcast %160 : vector<1x32xf32> to vector<8x32xf32>
    %163 = vector.broadcast %161 : vector<8x1xf32> to vector<8x32xf32>
    %164 = arith.mulf %162, %163 : vector<8x32xf32>
    %165 = arith.mulf %154, %147 : vector<8x32xf32>
    %166 = arith.addf %165, %159 : vector<8x32xf32>
    %167 = arith.addf %166, %164 : vector<8x32xf32>
    %168 = vector.extract_strided_slice %36 {offsets = [0, 3], sizes = [8, 1], strides = [1, 1]} : vector<8x16xf32> to vector<8x1xf32>
    %169 = vector.broadcast %168 : vector<8x1xf32> to vector<8x32xf32>
    %170 = arith.mulf %167, %169 : vector<8x32xf32>
    %cst_32 = arith.constant dense<0.000000e+00> : vector<32xf32>
    %171 = vector.multi_reduction <add>, %170, %cst_32 [0] : vector<8x32xf32> to vector<32xf32>
    %172 = vector.shape_cast %171 : vector<32xf32> to vector<1x32xf32>
    %c3 = arith.constant 3 : index
    %c0_33 = arith.constant 0 : index
    %173 = vector.load %arg11[%c3, %c0_33] : memref<16x32xf32, #tpu.memory_space<vmem>>, vector<1x32xf32>
    tpu.vector_store %arg11[%c3, %c0_33], %172 {strides = array<i32>} : memref<16x32xf32, #tpu.memory_space<vmem>>, vector<1x32xf32>,
    %174 = vector.extract_strided_slice %92 {offsets = [32, 0], sizes = [8, 32], strides = [1, 1]} : vector<128x32xf32> to vector<8x32xf32>
    %175 = vector.extract_strided_slice %41 {offsets = [4, 0], sizes = [1, 32], strides = [1, 1]} : vector<16x32xf32> to vector<1x32xf32>
    %176 = vector.extract_strided_slice %34 {offsets = [0, 4], sizes = [8, 1], strides = [1, 1]} : vector<8x16xf32> to vector<8x1xf32>
    %177 = vector.broadcast %175 : vector<1x32xf32> to vector<8x32xf32>
    %178 = vector.broadcast %176 : vector<8x1xf32> to vector<8x32xf32>
    %179 = arith.mulf %177, %178 : vector<8x32xf32>
    %180 = vector.extract_strided_slice %42 {offsets = [4, 0], sizes = [1, 32], strides = [1, 1]} : vector<16x32xf32> to vector<1x32xf32>
    %181 = vector.extract_strided_slice %35 {offsets = [0, 4], sizes = [8, 1], strides = [1, 1]} : vector<8x16xf32> to vector<8x1xf32>
    %182 = vector.broadcast %180 : vector<1x32xf32> to vector<8x32xf32>
    %183 = vector.broadcast %181 : vector<8x1xf32> to vector<8x32xf32>
    %184 = arith.mulf %182, %183 : vector<8x32xf32>
    %185 = arith.mulf %174, %167 : vector<8x32xf32>
    %186 = arith.addf %185, %179 : vector<8x32xf32>
    %187 = arith.addf %186, %184 : vector<8x32xf32>
    %188 = vector.extract_strided_slice %36 {offsets = [0, 4], sizes = [8, 1], strides = [1, 1]} : vector<8x16xf32> to vector<8x1xf32>
    %189 = vector.broadcast %188 : vector<8x1xf32> to vector<8x32xf32>
    %190 = arith.mulf %187, %189 : vector<8x32xf32>
    %cst_34 = arith.constant dense<0.000000e+00> : vector<32xf32>
    %191 = vector.multi_reduction <add>, %190, %cst_34 [0] : vector<8x32xf32> to vector<32xf32>
    %192 = vector.shape_cast %191 : vector<32xf32> to vector<1x32xf32>
    %c4 = arith.constant 4 : index
    %c0_35 = arith.constant 0 : index
    %193 = vector.load %arg11[%c4, %c0_35] : memref<16x32xf32, #tpu.memory_space<vmem>>, vector<1x32xf32>
    tpu.vector_store %arg11[%c4, %c0_35], %192 {strides = array<i32>} : memref<16x32xf32, #tpu.memory_space<vmem>>, vector<1x32xf32>,
    %194 = vector.extract_strided_slice %92 {offsets = [40, 0], sizes = [8, 32], strides = [1, 1]} : vector<128x32xf32> to vector<8x32xf32>
    %195 = vector.extract_strided_slice %41 {offsets = [5, 0], sizes = [1, 32], strides = [1, 1]} : vector<16x32xf32> to vector<1x32xf32>
    %196 = vector.extract_strided_slice %34 {offsets = [0, 5], sizes = [8, 1], strides = [1, 1]} : vector<8x16xf32> to vector<8x1xf32>
    %197 = vector.broadcast %195 : vector<1x32xf32> to vector<8x32xf32>
    %198 = vector.broadcast %196 : vector<8x1xf32> to vector<8x32xf32>
    %199 = arith.mulf %197, %198 : vector<8x32xf32>
    %200 = vector.extract_strided_slice %42 {offsets = [5, 0], sizes = [1, 32], strides = [1, 1]} : vector<16x32xf32> to vector<1x32xf32>
    %201 = vector.extract_strided_slice %35 {offsets = [0, 5], sizes = [8, 1], strides = [1, 1]} : vector<8x16xf32> to vector<8x1xf32>
    %202 = vector.broadcast %200 : vector<1x32xf32> to vector<8x32xf32>
    %203 = vector.broadcast %201 : vector<8x1xf32> to vector<8x32xf32>
    %204 = arith.mulf %202, %203 : vector<8x32xf32>
    %205 = arith.mulf %194, %187 : vector<8x32xf32>
    %206 = arith.addf %205, %199 : vector<8x32xf32>
    %207 = arith.addf %206, %204 : vector<8x32xf32>
    %208 = vector.extract_strided_slice %36 {offsets = [0, 5], sizes = [8, 1], strides = [1, 1]} : vector<8x16xf32> to vector<8x1xf32>
    %209 = vector.broadcast %208 : vector<8x1xf32> to vector<8x32xf32>
    %210 = arith.mulf %207, %209 : vector<8x32xf32>
    %cst_36 = arith.constant dense<0.000000e+00> : vector<32xf32>
    %211 = vector.multi_reduction <add>, %210, %cst_36 [0] : vector<8x32xf32> to vector<32xf32>
    %212 = vector.shape_cast %211 : vector<32xf32> to vector<1x32xf32>
    %c5 = arith.constant 5 : index
    %c0_37 = arith.constant 0 : index
    %213 = vector.load %arg11[%c5, %c0_37] : memref<16x32xf32, #tpu.memory_space<vmem>>, vector<1x32xf32>
    tpu.vector_store %arg11[%c5, %c0_37], %212 {strides = array<i32>} : memref<16x32xf32, #tpu.memory_space<vmem>>, vector<1x32xf32>,
    %214 = vector.extract_strided_slice %92 {offsets = [48, 0], sizes = [8, 32], strides = [1, 1]} : vector<128x32xf32> to vector<8x32xf32>
    %215 = vector.extract_strided_slice %41 {offsets = [6, 0], sizes = [1, 32], strides = [1, 1]} : vector<16x32xf32> to vector<1x32xf32>
    %216 = vector.extract_strided_slice %34 {offsets = [0, 6], sizes = [8, 1], strides = [1, 1]} : vector<8x16xf32> to vector<8x1xf32>
    %217 = vector.broadcast %215 : vector<1x32xf32> to vector<8x32xf32>
    %218 = vector.broadcast %216 : vector<8x1xf32> to vector<8x32xf32>
    %219 = arith.mulf %217, %218 : vector<8x32xf32>
    %220 = vector.extract_strided_slice %42 {offsets = [6, 0], sizes = [1, 32], strides = [1, 1]} : vector<16x32xf32> to vector<1x32xf32>
    %221 = vector.extract_strided_slice %35 {offsets = [0, 6], sizes = [8, 1], strides = [1, 1]} : vector<8x16xf32> to vector<8x1xf32>
    %222 = vector.broadcast %220 : vector<1x32xf32> to vector<8x32xf32>
    %223 = vector.broadcast %221 : vector<8x1xf32> to vector<8x32xf32>
    %224 = arith.mulf %222, %223 : vector<8x32xf32>
    %225 = arith.mulf %214, %207 : vector<8x32xf32>
    %226 = arith.addf %225, %219 : vector<8x32xf32>
    %227 = arith.addf %226, %224 : vector<8x32xf32>
    %228 = vector.extract_strided_slice %36 {offsets = [0, 6], sizes = [8, 1], strides = [1, 1]} : vector<8x16xf32> to vector<8x1xf32>
    %229 = vector.broadcast %228 : vector<8x1xf32> to vector<8x32xf32>
    %230 = arith.mulf %227, %229 : vector<8x32xf32>
    %cst_38 = arith.constant dense<0.000000e+00> : vector<32xf32>
    %231 = vector.multi_reduction <add>, %230, %cst_38 [0] : vector<8x32xf32> to vector<32xf32>
    %232 = vector.shape_cast %231 : vector<32xf32> to vector<1x32xf32>
    %c6 = arith.constant 6 : index
    %c0_39 = arith.constant 0 : index
    %233 = vector.load %arg11[%c6, %c0_39] : memref<16x32xf32, #tpu.memory_space<vmem>>, vector<1x32xf32>
    tpu.vector_store %arg11[%c6, %c0_39], %232 {strides = array<i32>} : memref<16x32xf32, #tpu.memory_space<vmem>>, vector<1x32xf32>,
    %234 = vector.extract_strided_slice %92 {offsets = [56, 0], sizes = [8, 32], strides = [1, 1]} : vector<128x32xf32> to vector<8x32xf32>
    %235 = vector.extract_strided_slice %41 {offsets = [7, 0], sizes = [1, 32], strides = [1, 1]} : vector<16x32xf32> to vector<1x32xf32>
    %236 = vector.extract_strided_slice %34 {offsets = [0, 7], sizes = [8, 1], strides = [1, 1]} : vector<8x16xf32> to vector<8x1xf32>
    %237 = vector.broadcast %235 : vector<1x32xf32> to vector<8x32xf32>
    %238 = vector.broadcast %236 : vector<8x1xf32> to vector<8x32xf32>
    %239 = arith.mulf %237, %238 : vector<8x32xf32>
    %240 = vector.extract_strided_slice %42 {offsets = [7, 0], sizes = [1, 32], strides = [1, 1]} : vector<16x32xf32> to vector<1x32xf32>
    %241 = vector.extract_strided_slice %35 {offsets = [0, 7], sizes = [8, 1], strides = [1, 1]} : vector<8x16xf32> to vector<8x1xf32>
    %242 = vector.broadcast %240 : vector<1x32xf32> to vector<8x32xf32>
    %243 = vector.broadcast %241 : vector<8x1xf32> to vector<8x32xf32>
    %244 = arith.mulf %242, %243 : vector<8x32xf32>
    %245 = arith.mulf %234, %227 : vector<8x32xf32>
    %246 = arith.addf %245, %239 : vector<8x32xf32>
    %247 = arith.addf %246, %244 : vector<8x32xf32>
    %248 = vector.extract_strided_slice %36 {offsets = [0, 7], sizes = [8, 1], strides = [1, 1]} : vector<8x16xf32> to vector<8x1xf32>
    %249 = vector.broadcast %248 : vector<8x1xf32> to vector<8x32xf32>
    %250 = arith.mulf %247, %249 : vector<8x32xf32>
    %cst_40 = arith.constant dense<0.000000e+00> : vector<32xf32>
    %251 = vector.multi_reduction <add>, %250, %cst_40 [0] : vector<8x32xf32> to vector<32xf32>
    %252 = vector.shape_cast %251 : vector<32xf32> to vector<1x32xf32>
    %c7 = arith.constant 7 : index
    %c0_41 = arith.constant 0 : index
    %253 = vector.load %arg11[%c7, %c0_41] : memref<16x32xf32, #tpu.memory_space<vmem>>, vector<1x32xf32>
    tpu.vector_store %arg11[%c7, %c0_41], %252 {strides = array<i32>} : memref<16x32xf32, #tpu.memory_space<vmem>>, vector<1x32xf32>,
    %cst_42 = arith.constant 0.000000e+00 : f32
    %254 = vector.broadcast %cst_42 : f32 to vector<8x32xf32>
    %255 = vector.extract_strided_slice %92 {offsets = [64, 0], sizes = [8, 32], strides = [1, 1]} : vector<128x32xf32> to vector<8x32xf32>
    %256 = vector.extract_strided_slice %41 {offsets = [8, 0], sizes = [1, 32], strides = [1, 1]} : vector<16x32xf32> to vector<1x32xf32>
    %257 = vector.extract_strided_slice %34 {offsets = [0, 8], sizes = [8, 1], strides = [1, 1]} : vector<8x16xf32> to vector<8x1xf32>
    %258 = vector.broadcast %256 : vector<1x32xf32> to vector<8x32xf32>
    %259 = vector.broadcast %257 : vector<8x1xf32> to vector<8x32xf32>
    %260 = arith.mulf %258, %259 : vector<8x32xf32>
    %261 = vector.extract_strided_slice %42 {offsets = [8, 0], sizes = [1, 32], strides = [1, 1]} : vector<16x32xf32> to vector<1x32xf32>
    %262 = vector.extract_strided_slice %35 {offsets = [0, 8], sizes = [8, 1], strides = [1, 1]} : vector<8x16xf32> to vector<8x1xf32>
    %263 = vector.broadcast %261 : vector<1x32xf32> to vector<8x32xf32>
    %264 = vector.broadcast %262 : vector<8x1xf32> to vector<8x32xf32>
    %265 = arith.mulf %263, %264 : vector<8x32xf32>
    %266 = arith.mulf %255, %254 : vector<8x32xf32>
    %267 = arith.addf %266, %260 : vector<8x32xf32>
    %268 = arith.addf %267, %265 : vector<8x32xf32>
    %269 = vector.extract_strided_slice %36 {offsets = [0, 8], sizes = [8, 1], strides = [1, 1]} : vector<8x16xf32> to vector<8x1xf32>
    %270 = vector.broadcast %269 : vector<8x1xf32> to vector<8x32xf32>
    %271 = arith.mulf %268, %270 : vector<8x32xf32>
    %cst_43 = arith.constant dense<0.000000e+00> : vector<32xf32>
    %272 = vector.multi_reduction <add>, %271, %cst_43 [0] : vector<8x32xf32> to vector<32xf32>
    %273 = vector.shape_cast %272 : vector<32xf32> to vector<1x32xf32>
    %c8 = arith.constant 8 : index
    %c0_44 = arith.constant 0 : index
    %274 = vector.load %arg11[%c8, %c0_44] : memref<16x32xf32, #tpu.memory_space<vmem>>, vector<1x32xf32>
    tpu.vector_store %arg11[%c8, %c0_44], %273 {strides = array<i32>} : memref<16x32xf32, #tpu.memory_space<vmem>>, vector<1x32xf32>,
    %275 = vector.extract_strided_slice %92 {offsets = [72, 0], sizes = [8, 32], strides = [1, 1]} : vector<128x32xf32> to vector<8x32xf32>
    %276 = vector.extract_strided_slice %41 {offsets = [9, 0], sizes = [1, 32], strides = [1, 1]} : vector<16x32xf32> to vector<1x32xf32>
    %277 = vector.extract_strided_slice %34 {offsets = [0, 9], sizes = [8, 1], strides = [1, 1]} : vector<8x16xf32> to vector<8x1xf32>
    %278 = vector.broadcast %276 : vector<1x32xf32> to vector<8x32xf32>
    %279 = vector.broadcast %277 : vector<8x1xf32> to vector<8x32xf32>
    %280 = arith.mulf %278, %279 : vector<8x32xf32>
    %281 = vector.extract_strided_slice %42 {offsets = [9, 0], sizes = [1, 32], strides = [1, 1]} : vector<16x32xf32> to vector<1x32xf32>
    %282 = vector.extract_strided_slice %35 {offsets = [0, 9], sizes = [8, 1], strides = [1, 1]} : vector<8x16xf32> to vector<8x1xf32>
    %283 = vector.broadcast %281 : vector<1x32xf32> to vector<8x32xf32>
    %284 = vector.broadcast %282 : vector<8x1xf32> to vector<8x32xf32>
    %285 = arith.mulf %283, %284 : vector<8x32xf32>
    %286 = arith.mulf %275, %268 : vector<8x32xf32>
    %287 = arith.addf %286, %280 : vector<8x32xf32>
    %288 = arith.addf %287, %285 : vector<8x32xf32>
    %289 = vector.extract_strided_slice %36 {offsets = [0, 9], sizes = [8, 1], strides = [1, 1]} : vector<8x16xf32> to vector<8x1xf32>
    %290 = vector.broadcast %289 : vector<8x1xf32> to vector<8x32xf32>
    %291 = arith.mulf %288, %290 : vector<8x32xf32>
    %cst_45 = arith.constant dense<0.000000e+00> : vector<32xf32>
    %292 = vector.multi_reduction <add>, %291, %cst_45 [0] : vector<8x32xf32> to vector<32xf32>
    %293 = vector.shape_cast %292 : vector<32xf32> to vector<1x32xf32>
    %c9 = arith.constant 9 : index
    %c0_46 = arith.constant 0 : index
    %294 = vector.load %arg11[%c9, %c0_46] : memref<16x32xf32, #tpu.memory_space<vmem>>, vector<1x32xf32>
    tpu.vector_store %arg11[%c9, %c0_46], %293 {strides = array<i32>} : memref<16x32xf32, #tpu.memory_space<vmem>>, vector<1x32xf32>,
    %295 = vector.extract_strided_slice %92 {offsets = [80, 0], sizes = [8, 32], strides = [1, 1]} : vector<128x32xf32> to vector<8x32xf32>
    %296 = vector.extract_strided_slice %41 {offsets = [10, 0], sizes = [1, 32], strides = [1, 1]} : vector<16x32xf32> to vector<1x32xf32>
    %297 = vector.extract_strided_slice %34 {offsets = [0, 10], sizes = [8, 1], strides = [1, 1]} : vector<8x16xf32> to vector<8x1xf32>
    %298 = vector.broadcast %296 : vector<1x32xf32> to vector<8x32xf32>
    %299 = vector.broadcast %297 : vector<8x1xf32> to vector<8x32xf32>
    %300 = arith.mulf %298, %299 : vector<8x32xf32>
    %301 = vector.extract_strided_slice %42 {offsets = [10, 0], sizes = [1, 32], strides = [1, 1]} : vector<16x32xf32> to vector<1x32xf32>
    %302 = vector.extract_strided_slice %35 {offsets = [0, 10], sizes = [8, 1], strides = [1, 1]} : vector<8x16xf32> to vector<8x1xf32>
    %303 = vector.broadcast %301 : vector<1x32xf32> to vector<8x32xf32>
    %304 = vector.broadcast %302 : vector<8x1xf32> to vector<8x32xf32>
    %305 = arith.mulf %303, %304 : vector<8x32xf32>
    %306 = arith.mulf %295, %288 : vector<8x32xf32>
    %307 = arith.addf %306, %300 : vector<8x32xf32>
    %308 = arith.addf %307, %305 : vector<8x32xf32>
    %309 = vector.extract_strided_slice %36 {offsets = [0, 10], sizes = [8, 1], strides = [1, 1]} : vector<8x16xf32> to vector<8x1xf32>
    %310 = vector.broadcast %309 : vector<8x1xf32> to vector<8x32xf32>
    %311 = arith.mulf %308, %310 : vector<8x32xf32>
    %cst_47 = arith.constant dense<0.000000e+00> : vector<32xf32>
    %312 = vector.multi_reduction <add>, %311, %cst_47 [0] : vector<8x32xf32> to vector<32xf32>
    %313 = vector.shape_cast %312 : vector<32xf32> to vector<1x32xf32>
    %c10 = arith.constant 10 : index
    %c0_48 = arith.constant 0 : index
    %314 = vector.load %arg11[%c10, %c0_48] : memref<16x32xf32, #tpu.memory_space<vmem>>, vector<1x32xf32>
    tpu.vector_store %arg11[%c10, %c0_48], %313 {strides = array<i32>} : memref<16x32xf32, #tpu.memory_space<vmem>>, vector<1x32xf32>,
    %315 = vector.extract_strided_slice %92 {offsets = [88, 0], sizes = [8, 32], strides = [1, 1]} : vector<128x32xf32> to vector<8x32xf32>
    %316 = vector.extract_strided_slice %41 {offsets = [11, 0], sizes = [1, 32], strides = [1, 1]} : vector<16x32xf32> to vector<1x32xf32>
    %317 = vector.extract_strided_slice %34 {offsets = [0, 11], sizes = [8, 1], strides = [1, 1]} : vector<8x16xf32> to vector<8x1xf32>
    %318 = vector.broadcast %316 : vector<1x32xf32> to vector<8x32xf32>
    %319 = vector.broadcast %317 : vector<8x1xf32> to vector<8x32xf32>
    %320 = arith.mulf %318, %319 : vector<8x32xf32>
    %321 = vector.extract_strided_slice %42 {offsets = [11, 0], sizes = [1, 32], strides = [1, 1]} : vector<16x32xf32> to vector<1x32xf32>
    %322 = vector.extract_strided_slice %35 {offsets = [0, 11], sizes = [8, 1], strides = [1, 1]} : vector<8x16xf32> to vector<8x1xf32>
    %323 = vector.broadcast %321 : vector<1x32xf32> to vector<8x32xf32>
    %324 = vector.broadcast %322 : vector<8x1xf32> to vector<8x32xf32>
    %325 = arith.mulf %323, %324 : vector<8x32xf32>
    %326 = arith.mulf %315, %308 : vector<8x32xf32>
    %327 = arith.addf %326, %320 : vector<8x32xf32>
    %328 = arith.addf %327, %325 : vector<8x32xf32>
    %329 = vector.extract_strided_slice %36 {offsets = [0, 11], sizes = [8, 1], strides = [1, 1]} : vector<8x16xf32> to vector<8x1xf32>
    %330 = vector.broadcast %329 : vector<8x1xf32> to vector<8x32xf32>
    %331 = arith.mulf %328, %330 : vector<8x32xf32>
    %cst_49 = arith.constant dense<0.000000e+00> : vector<32xf32>
    %332 = vector.multi_reduction <add>, %331, %cst_49 [0] : vector<8x32xf32> to vector<32xf32>
    %333 = vector.shape_cast %332 : vector<32xf32> to vector<1x32xf32>
    %c11 = arith.constant 11 : index
    %c0_50 = arith.constant 0 : index
    %334 = vector.load %arg11[%c11, %c0_50] : memref<16x32xf32, #tpu.memory_space<vmem>>, vector<1x32xf32>
    tpu.vector_store %arg11[%c11, %c0_50], %333 {strides = array<i32>} : memref<16x32xf32, #tpu.memory_space<vmem>>, vector<1x32xf32>,
    %335 = vector.extract_strided_slice %92 {offsets = [96, 0], sizes = [8, 32], strides = [1, 1]} : vector<128x32xf32> to vector<8x32xf32>
    %336 = vector.extract_strided_slice %41 {offsets = [12, 0], sizes = [1, 32], strides = [1, 1]} : vector<16x32xf32> to vector<1x32xf32>
    %337 = vector.extract_strided_slice %34 {offsets = [0, 12], sizes = [8, 1], strides = [1, 1]} : vector<8x16xf32> to vector<8x1xf32>
    %338 = vector.broadcast %336 : vector<1x32xf32> to vector<8x32xf32>
    %339 = vector.broadcast %337 : vector<8x1xf32> to vector<8x32xf32>
    %340 = arith.mulf %338, %339 : vector<8x32xf32>
    %341 = vector.extract_strided_slice %42 {offsets = [12, 0], sizes = [1, 32], strides = [1, 1]} : vector<16x32xf32> to vector<1x32xf32>
    %342 = vector.extract_strided_slice %35 {offsets = [0, 12], sizes = [8, 1], strides = [1, 1]} : vector<8x16xf32> to vector<8x1xf32>
    %343 = vector.broadcast %341 : vector<1x32xf32> to vector<8x32xf32>
    %344 = vector.broadcast %342 : vector<8x1xf32> to vector<8x32xf32>
    %345 = arith.mulf %343, %344 : vector<8x32xf32>
    %346 = arith.mulf %335, %328 : vector<8x32xf32>
    %347 = arith.addf %346, %340 : vector<8x32xf32>
    %348 = arith.addf %347, %345 : vector<8x32xf32>
    %349 = vector.extract_strided_slice %36 {offsets = [0, 12], sizes = [8, 1], strides = [1, 1]} : vector<8x16xf32> to vector<8x1xf32>
    %350 = vector.broadcast %349 : vector<8x1xf32> to vector<8x32xf32>
    %351 = arith.mulf %348, %350 : vector<8x32xf32>
    %cst_51 = arith.constant dense<0.000000e+00> : vector<32xf32>
    %352 = vector.multi_reduction <add>, %351, %cst_51 [0] : vector<8x32xf32> to vector<32xf32>
    %353 = vector.shape_cast %352 : vector<32xf32> to vector<1x32xf32>
    %c12 = arith.constant 12 : index
    %c0_52 = arith.constant 0 : index
    %354 = vector.load %arg11[%c12, %c0_52] : memref<16x32xf32, #tpu.memory_space<vmem>>, vector<1x32xf32>
    tpu.vector_store %arg11[%c12, %c0_52], %353 {strides = array<i32>} : memref<16x32xf32, #tpu.memory_space<vmem>>, vector<1x32xf32>,
    %355 = vector.extract_strided_slice %92 {offsets = [104, 0], sizes = [8, 32], strides = [1, 1]} : vector<128x32xf32> to vector<8x32xf32>
    %356 = vector.extract_strided_slice %41 {offsets = [13, 0], sizes = [1, 32], strides = [1, 1]} : vector<16x32xf32> to vector<1x32xf32>
    %357 = vector.extract_strided_slice %34 {offsets = [0, 13], sizes = [8, 1], strides = [1, 1]} : vector<8x16xf32> to vector<8x1xf32>
    %358 = vector.broadcast %356 : vector<1x32xf32> to vector<8x32xf32>
    %359 = vector.broadcast %357 : vector<8x1xf32> to vector<8x32xf32>
    %360 = arith.mulf %358, %359 : vector<8x32xf32>
    %361 = vector.extract_strided_slice %42 {offsets = [13, 0], sizes = [1, 32], strides = [1, 1]} : vector<16x32xf32> to vector<1x32xf32>
    %362 = vector.extract_strided_slice %35 {offsets = [0, 13], sizes = [8, 1], strides = [1, 1]} : vector<8x16xf32> to vector<8x1xf32>
    %363 = vector.broadcast %361 : vector<1x32xf32> to vector<8x32xf32>
    %364 = vector.broadcast %362 : vector<8x1xf32> to vector<8x32xf32>
    %365 = arith.mulf %363, %364 : vector<8x32xf32>
    %366 = arith.mulf %355, %348 : vector<8x32xf32>
    %367 = arith.addf %366, %360 : vector<8x32xf32>
    %368 = arith.addf %367, %365 : vector<8x32xf32>
    %369 = vector.extract_strided_slice %36 {offsets = [0, 13], sizes = [8, 1], strides = [1, 1]} : vector<8x16xf32> to vector<8x1xf32>
    %370 = vector.broadcast %369 : vector<8x1xf32> to vector<8x32xf32>
    %371 = arith.mulf %368, %370 : vector<8x32xf32>
    %cst_53 = arith.constant dense<0.000000e+00> : vector<32xf32>
    %372 = vector.multi_reduction <add>, %371, %cst_53 [0] : vector<8x32xf32> to vector<32xf32>
    %373 = vector.shape_cast %372 : vector<32xf32> to vector<1x32xf32>
    %c13 = arith.constant 13 : index
    %c0_54 = arith.constant 0 : index
    %374 = vector.load %arg11[%c13, %c0_54] : memref<16x32xf32, #tpu.memory_space<vmem>>, vector<1x32xf32>
    tpu.vector_store %arg11[%c13, %c0_54], %373 {strides = array<i32>} : memref<16x32xf32, #tpu.memory_space<vmem>>, vector<1x32xf32>,
    %375 = vector.extract_strided_slice %92 {offsets = [112, 0], sizes = [8, 32], strides = [1, 1]} : vector<128x32xf32> to vector<8x32xf32>
    %376 = vector.extract_strided_slice %41 {offsets = [14, 0], sizes = [1, 32], strides = [1, 1]} : vector<16x32xf32> to vector<1x32xf32>
    %377 = vector.extract_strided_slice %34 {offsets = [0, 14], sizes = [8, 1], strides = [1, 1]} : vector<8x16xf32> to vector<8x1xf32>
    %378 = vector.broadcast %376 : vector<1x32xf32> to vector<8x32xf32>
    %379 = vector.broadcast %377 : vector<8x1xf32> to vector<8x32xf32>
    %380 = arith.mulf %378, %379 : vector<8x32xf32>
    %381 = vector.extract_strided_slice %42 {offsets = [14, 0], sizes = [1, 32], strides = [1, 1]} : vector<16x32xf32> to vector<1x32xf32>
    %382 = vector.extract_strided_slice %35 {offsets = [0, 14], sizes = [8, 1], strides = [1, 1]} : vector<8x16xf32> to vector<8x1xf32>
    %383 = vector.broadcast %381 : vector<1x32xf32> to vector<8x32xf32>
    %384 = vector.broadcast %382 : vector<8x1xf32> to vector<8x32xf32>
    %385 = arith.mulf %383, %384 : vector<8x32xf32>
    %386 = arith.mulf %375, %368 : vector<8x32xf32>
    %387 = arith.addf %386, %380 : vector<8x32xf32>
    %388 = arith.addf %387, %385 : vector<8x32xf32>
    %389 = vector.extract_strided_slice %36 {offsets = [0, 14], sizes = [8, 1], strides = [1, 1]} : vector<8x16xf32> to vector<8x1xf32>
    %390 = vector.broadcast %389 : vector<8x1xf32> to vector<8x32xf32>
    %391 = arith.mulf %388, %390 : vector<8x32xf32>
    %cst_55 = arith.constant dense<0.000000e+00> : vector<32xf32>
    %392 = vector.multi_reduction <add>, %391, %cst_55 [0] : vector<8x32xf32> to vector<32xf32>
    %393 = vector.shape_cast %392 : vector<32xf32> to vector<1x32xf32>
    %c14 = arith.constant 14 : index
    %c0_56 = arith.constant 0 : index
    %394 = vector.load %arg11[%c14, %c0_56] : memref<16x32xf32, #tpu.memory_space<vmem>>, vector<1x32xf32>
    tpu.vector_store %arg11[%c14, %c0_56], %393 {strides = array<i32>} : memref<16x32xf32, #tpu.memory_space<vmem>>, vector<1x32xf32>,
    %395 = vector.extract_strided_slice %92 {offsets = [120, 0], sizes = [8, 32], strides = [1, 1]} : vector<128x32xf32> to vector<8x32xf32>
    %396 = vector.extract_strided_slice %41 {offsets = [15, 0], sizes = [1, 32], strides = [1, 1]} : vector<16x32xf32> to vector<1x32xf32>
    %397 = vector.extract_strided_slice %34 {offsets = [0, 15], sizes = [8, 1], strides = [1, 1]} : vector<8x16xf32> to vector<8x1xf32>
    %398 = vector.broadcast %396 : vector<1x32xf32> to vector<8x32xf32>
    %399 = vector.broadcast %397 : vector<8x1xf32> to vector<8x32xf32>
    %400 = arith.mulf %398, %399 : vector<8x32xf32>
    %401 = vector.extract_strided_slice %42 {offsets = [15, 0], sizes = [1, 32], strides = [1, 1]} : vector<16x32xf32> to vector<1x32xf32>
    %402 = vector.extract_strided_slice %35 {offsets = [0, 15], sizes = [8, 1], strides = [1, 1]} : vector<8x16xf32> to vector<8x1xf32>
    %403 = vector.broadcast %401 : vector<1x32xf32> to vector<8x32xf32>
    %404 = vector.broadcast %402 : vector<8x1xf32> to vector<8x32xf32>
    %405 = arith.mulf %403, %404 : vector<8x32xf32>
    %406 = arith.mulf %395, %388 : vector<8x32xf32>
    %407 = arith.addf %406, %400 : vector<8x32xf32>
    %408 = arith.addf %407, %405 : vector<8x32xf32>
    %409 = vector.extract_strided_slice %36 {offsets = [0, 15], sizes = [8, 1], strides = [1, 1]} : vector<8x16xf32> to vector<8x1xf32>
    %410 = vector.broadcast %409 : vector<8x1xf32> to vector<8x32xf32>
    %411 = arith.mulf %408, %410 : vector<8x32xf32>
    %cst_57 = arith.constant dense<0.000000e+00> : vector<32xf32>
    %412 = vector.multi_reduction <add>, %411, %cst_57 [0] : vector<8x32xf32> to vector<32xf32>
    %413 = vector.shape_cast %412 : vector<32xf32> to vector<1x32xf32>
    %c15 = arith.constant 15 : index
    %c0_58 = arith.constant 0 : index
    %414 = vector.load %arg11[%c15, %c0_58] : memref<16x32xf32, #tpu.memory_space<vmem>>, vector<1x32xf32>
    tpu.vector_store %arg11[%c15, %c0_58], %413 {strides = array<i32>} : memref<16x32xf32, #tpu.memory_space<vmem>>, vector<1x32xf32>,
    %c0_59 = arith.constant 0 : index
    %c0_60 = arith.constant 0 : index
    %415 = vector.load %arg11[%c0_59, %c0_60] : memref<16x32xf32, #tpu.memory_space<vmem>>, vector<16x32xf32>
    %416 = arith.addf %0, %1 : vector<16x32xf32>
    %c0_61 = arith.constant 0 : index
    %c0_62 = arith.constant 0 : index
    %417 = vector.load %arg8[%c0_61, %c0_62] : memref<1x32xf32, #tpu.memory_space<vmem>>, vector<1x32xf32>
    %418 = vector.broadcast %417 : vector<1x32xf32> to vector<16x32xf32>
    %419 = arith.mulf %416, %418 : vector<16x32xf32>
    %420 = arith.addf %415, %419 : vector<16x32xf32>
    %c0_63 = arith.constant 0 : index
    %c0_64 = arith.constant 0 : index
    %421 = vector.load %arg9[%c0_63, %c0_64] : memref<1x32xf32, #tpu.memory_space<vmem>>, vector<1x32xf32>
    %cst_65 = arith.constant dense<0.000000e+00> : vector<1x16xf32>
    %422 = tpu.matmul %421, %420, %cst_65 {dimension_numbers = #tpu.dot_dimension_numbers<[1], [1], [0], [0], [0, 0, 1, 0], [], []>} : vector<1x32xf32>, vector<16x32xf32>, vector<1x16xf32> -> vector<1x16xf32>
    %c0_66 = arith.constant 0 : index
    %c0_67 = arith.constant 0 : index
    %c0_68 = arith.constant 0 : index
    %423 = vector.load %arg10[%c0_66, %c0_67, %c0_68] : memref<1x1x16xf32, #tpu.memory_space<vmem>>, vector<1x1x16xf32>
    %424 = vector.shape_cast %423 : vector<1x1x16xf32> to vector<1x16xf32>
    %425 = vector.shape_cast %422 : vector<1x16xf32> to vector<1x1x16xf32>
    tpu.vector_store %arg10[%c0_66, %c0_67, %c0_68], %425 {strides = array<i32>} : memref<1x1x16xf32, #tpu.memory_space<vmem>>, vector<1x1x16xf32>,
    return
  }
  func.func @transform_0(%arg0: i32) -> (i32, i32) {
    %c0_i32 = arith.constant 0 : i32
    %c0_i32_0 = arith.constant 0 : i32
    return %arg0, %c0_i32 : i32, i32
  }
  func.func @transform_1(%arg0: i32) -> (i32, i32) {
    %c0_i32 = arith.constant 0 : i32
    %c0_i32_0 = arith.constant 0 : i32
    return %arg0, %c0_i32 : i32, i32
  }
  func.func @transform_2(%arg0: i32) -> (i32, i32) {
    %c0_i32 = arith.constant 0 : i32
    %c0_i32_0 = arith.constant 0 : i32
    %c0_i32_1 = arith.constant 0 : i32
    return %c0_i32, %c0_i32_0 : i32, i32
  }
  func.func @transform_3(%arg0: i32) -> (i32, i32) {
    %c0_i32 = arith.constant 0 : i32
    %c0_i32_0 = arith.constant 0 : i32
    %c0_i32_1 = arith.constant 0 : i32
    return %c0_i32, %c0_i32_0 : i32, i32
  }
  func.func @transform_4(%arg0: i32) -> (i32, i32) {
    %c0_i32 = arith.constant 0 : i32
    %c0_i32_0 = arith.constant 0 : i32
    %c0_i32_1 = arith.constant 0 : i32
    return %c0_i32, %c0_i32_0 : i32, i32
  }
  func.func @transform_5(%arg0: i32) -> (i32, i32) {
    %c0_i32 = arith.constant 0 : i32
    %c0_i32_0 = arith.constant 0 : i32
    %c0_i32_1 = arith.constant 0 : i32
    return %c0_i32, %c0_i32_0 : i32, i32
  }
  func.func @transform_6(%arg0: i32) -> (i32, i32) {
    %c0_i32 = arith.constant 0 : i32
    %c0_i32_0 = arith.constant 0 : i32
    %c0_i32_1 = arith.constant 0 : i32
    return %c0_i32, %c0_i32_0 : i32, i32
  }
  func.func @transform_7(%arg0: i32) -> (i32, i32) {
    %c0_i32 = arith.constant 0 : i32
    %c0_i32_0 = arith.constant 0 : i32
    %c0_i32_1 = arith.constant 0 : i32
    return %c0_i32, %c0_i32_0 : i32, i32
  }
  func.func @transform_8(%arg0: i32) -> (i32, i32) {
    %c0_i32 = arith.constant 0 : i32
    %c0_i32_0 = arith.constant 0 : i32
    %c0_i32_1 = arith.constant 0 : i32
    return %c0_i32, %c0_i32_0 : i32, i32
  }
  func.func @transform_9(%arg0: i32) -> (i32, i32, i32) {
    %c0_i32 = arith.constant 0 : i32
    %c0_i32_0 = arith.constant 0 : i32
    %c0_i32_1 = arith.constant 0 : i32
    return %arg0, %c0_i32, %c0_i32_0 : i32, i32, i32
  }
}

</mosaic_0001>

<bundles_post_ra>
// kernel: tpu_custom_call.1
= control target key start
LH: loop header
LB: loop body
LE: loop exit
PB: predicated region body
PF: predicated region fallthrough
CT: control target
= control target key end

     0   :  { %14 = vsyncpa [#allocation4], 0  ;;  %s2205_s0 = inlined_call_operand.hbm [shape: f32[16,32], index: 0, kind: input, shape index: {}]   ;;  %s2206_s1 = inlined_call_operand.hbm [shape: f32[16,32], index: 1, kind: input, shape index: {}]   ;;  %s2207_s2 = inlined_call_operand.hbm [shape: f32[32,32], index: 2, kind: input, shape index: {}]   ;;  %s2208_s3 = inlined_call_operand.hbm [shape: f32[32,32], index: 3, kind: input, shape index: {}]   ;;  %s2209_s4 = inlined_call_operand.hbm [shape: f32[24,32], index: 4, kind: input, shape index: {}]   ;;  %s2210_s5 = inlined_call_operand.vmem [shape: f32[1,32], index: 5, kind: input, shape index: {}]   ;;  %s2211_s6 = inlined_call_operand.vmem [shape: f32[8,32], index: 6, kind: input, shape index: {}]   ;;  %s2212_s7 = inlined_call_operand.vmem [shape: f32[1,32], index: 7, kind: input, shape index: {}]   ;;  %s2213_s8 = inlined_call_operand.vmem [shape: f32[1,32], index: 8, kind: input, shape index: {}]   ;;  %s2214_s9 = inlined_call_operand.hbm [shape: f32[1,1,16], index: 9, kind: output, shape index: {}]  }
   0x1   :  { %15 = vsyncpa [#allocation7], 0 }
   0x2   :  { %16 = vsyncpa [#allocation10], 0 }
   0x3   :  { %17 = vsyncpa [#allocation5], 0  ;;  %s1562_s30 = smov [#allocation6]   ;;  %s1563_s11 = smov [#allocation9]  }
   0x4   :  { %s35_s10 = sshll.u32 %s1562_s30, 4  ;;  %s59_s12 = sshll.u32 %s1563_s11, 4  ;;  %s36_s10 = int_to_ptr.vmem [resolvable:$true] %s35_s10  ;;  %s1639_s12 = int_to_ptr.vmem [resolvable:$true] %s59_s12 }
   0x5   :  { %s1422_s15 = scalar_lea.hbm %s2206_s1, 256 }
   0x6   :  { %p1423_p0 = scmp.ne.s32.totalorder %s2206_s1, %s1422_s15  ;;  %p1426_p1 = scmp.lt.u32.totalorder %s1422_s15, %s2206_s1 }
   0x8   :  { %p1428_p2 = pnand %p1426_p1, %p1423_p0 }
   0xa   :  { %1431 = shalt.err (!%p1428_p2)
}
   0xb   :  { %s1432_s20 = scalar_lea.vmem %s36_s10, 256  ;;  %p1437_p4 = scmp.lt.s32.totalorder %s36_s10, %s36_s10 }
   0xc   :  { %p1433_p3 = scmp.ne.s32.totalorder %s36_s10, %s1432_s20  ;;  %p1438_p5 = scmp.lt.s32.totalorder %s1432_s20, %s1432_s20 }
   0xe   :  { %p1439_p6 = por %p1438_p5, %p1437_p4 }
  0x10   :  { %p1440_p7 = pnand %p1439_p6, %p1433_p3 }
  0x12   :  { %1443 = shalt.err (!%p1440_p7)
}
  0x13   :  { %s1564_s21 = smov 128   ;;  %s1565_s22 = smov 8  }
  0x14   :  { %41 = dma.hbm_to_vmem [thread:$0]  %s2206_s1, 256, %s36_s10, [#allocation7], %s1564_s21, %s1564_s21, %s1565_s22  }
  0x15   :  { %s1444_s27 = scalar_lea.hbm %s2208_s3, 512 }
  0x16   :  { %p1445_p8 = scmp.ne.s32.totalorder %s2208_s3, %s1444_s27  ;;  %p1448_p9 = scmp.lt.u32.totalorder %s1444_s27, %s2208_s3 }
  0x18   :  { %p1450_p10 = pnand %p1448_p9, %p1445_p8 }
  0x1a   :  { %1453 = shalt.err (!%p1450_p10)
}
  0x1b   :  { %s1454_s13 = scalar_lea.vmem %s1639_s12, 512  ;;  %p1459_p12 = scmp.lt.s32.totalorder %s1639_s12, %s1639_s12 }
  0x1c   :  { %p1455_p11 = scmp.ne.s32.totalorder %s1639_s12, %s1454_s13  ;;  %p1460_p13 = scmp.lt.s32.totalorder %s1454_s13, %s1454_s13 }
  0x1e   :  { %p1461_p0 = por %p1460_p13, %p1459_p12 }
  0x20   :  { %p1462_p1 = pnand %p1461_p0, %p1455_p11 }
  0x22   :  { %1465 = shalt.err (!%p1462_p1)
}
  0x23   :  { %65 = dma.hbm_to_vmem [thread:$0]  %s2208_s3, 512, %s1639_s12, [#allocation10], %s1564_s21, %s1564_s21, %s1565_s22  }
  0x24   :  { %s1566_s14 = smov [#allocation3]   ;;  %s1567_s16 = smov [#allocation8]  }
  0x25   :  { %s23_s15 = sshll.u32 %s1566_s14, 4  ;;  %s47_s17 = sshll.u32 %s1567_s16, 4  ;;  %s24_s15 = int_to_ptr.vmem [resolvable:$true] %s23_s15  ;;  %s1676_s17 = int_to_ptr.vmem [resolvable:$true] %s47_s17 }
  0x26   :  { %s1466_s20 = scalar_lea.hbm %s2205_s0, 256 }
  0x27   :  { %p1467_p2 = scmp.ne.s32.totalorder %s2205_s0, %s1466_s20  ;;  %p1470_p3 = scmp.lt.u32.totalorder %s1466_s20, %s2205_s0 }
  0x29   :  { %p1472_p4 = pnand %p1470_p3, %p1467_p2 }
  0x2b   :  { %1475 = shalt.err (!%p1472_p4)
}
  0x2c   :  { %s1476_s3 = scalar_lea.vmem %s24_s15, 256  ;;  %p1481_p6 = scmp.lt.s32.totalorder %s24_s15, %s24_s15 }
  0x2d   :  { %p1477_p5 = scmp.ne.s32.totalorder %s24_s15, %s1476_s3  ;;  %p1482_p7 = scmp.lt.s32.totalorder %s1476_s3, %s1476_s3 }
  0x2f   :  { %p1483_p8 = por %p1482_p7, %p1481_p6 }
  0x31   :  { %p1484_p9 = pnand %p1483_p8, %p1477_p5 }
  0x33   :  { %1487 = shalt.err (!%p1484_p9)
}
  0x34   :  { %29 = dma.hbm_to_vmem [thread:$0]  %s2205_s0, 256, %s24_s15, [#allocation4], %s1564_s21, %s1564_s21, %s1565_s22  }
  0x35   :  { %s1488_s30 = scalar_lea.hbm %s2207_s2, 512 }
  0x36   :  { %p1489_p10 = scmp.ne.s32.totalorder %s2207_s2, %s1488_s30  ;;  %p1492_p11 = scmp.lt.u32.totalorder %s1488_s30, %s2207_s2 }
  0x38   :  { %p1494_p12 = pnand %p1492_p11, %p1489_p10 }
  0x3a   :  { %1497 = shalt.err (!%p1494_p12)
}
  0x3b   :  { %s1498_s14 = scalar_lea.vmem %s1676_s17, 512  ;;  %p1503_p0 = scmp.lt.s32.totalorder %s1676_s17, %s1676_s17 }
  0x3c   :  { %p1499_p13 = scmp.ne.s32.totalorder %s1676_s17, %s1498_s14  ;;  %p1504_p1 = scmp.lt.s32.totalorder %s1498_s14, %s1498_s14 }
  0x3e   :  { %p1505_p2 = por %p1504_p1, %p1503_p0 }
  0x40   :  { %p1506_p3 = pnand %p1505_p2, %p1499_p13 }
  0x42   :  { %1509 = shalt.err (!%p1506_p3)
}
  0x43   :  { %53 = dma.hbm_to_vmem [thread:$0]  %s2207_s2, 512, %s1676_s17, [#allocation7], %s1564_s21, %s1564_s21, %s1565_s22  }
  0x44   :  { %s1568_s16 = smov [#allocation11]   ;;  %s1510_s23 = scalar_lea.hbm %s2209_s4, 384 }
  0x45   :  { %s71_s18 = sshll.u32 %s1568_s16, 4  ;;  %p1511_p4 = scmp.ne.s32.totalorder %s2209_s4, %s1510_s23  ;;  %s72_s18 = int_to_ptr.vmem [resolvable:$true] %s71_s18 }
  0x46   :  { %p1514_p5 = scmp.lt.u32.totalorder %s1510_s23, %s2209_s4 }
  0x48   :  { %p1516_p6 = pnand %p1514_p5, %p1511_p4 }
  0x4a   :  { %1519 = shalt.err (!%p1516_p6)
}
  0x4b   :  { %s1520_s12 = scalar_lea.vmem %s72_s18, 384  ;;  %p1525_p8 = scmp.lt.s32.totalorder %s72_s18, %s72_s18 }
  0x4c   :  { %p1521_p7 = scmp.ne.s32.totalorder %s72_s18, %s1520_s12  ;;  %p1526_p9 = scmp.lt.s32.totalorder %s1520_s12, %s1520_s12 }
  0x4e   :  { %p1527_p10 = por %p1526_p9, %p1525_p8 }
  0x50   :  { %p1528_p11 = pnand %p1527_p10, %p1521_p7 }
  0x52   :  { %1531 = shalt.err (!%p1528_p11)
}
  0x53   :  { %77 = dma.hbm_to_vmem [thread:$0]  %s2209_s4, 384, %s72_s18, [#allocation10], %s1564_s21, %s1564_s21, %s1565_s22  }
  0x54   :  { %1554 = dma.done.wait [#allocation4], 256  }
  0x55   :  { %1555 = vsyncadd [#allocation4], 4294967040 }
  0x56   :  { %1556 = dma.done.wait [#allocation7], 768  }
  0x57   :  { %1557 = vsyncadd [#allocation7], 4294966528 }
  0x58   :  { %1558 = dma.done.wait [#allocation10], 896  }
  0x59   :  { %1559 = vsyncadd [#allocation10], 4294966400  ;;  %vm116_vm0 = vcmask 261120   ;;  %v105_v0 = vld [vmem:[#allocation8] sm:$0xff]  ;;  %v106_v1 = vld [vmem:[#allocation8 + $0x8] sm:$0xff]  ;;  %v1569_v15 = vmov 0.0|0.0   ;;  %v419_v56 = vlaneseq }
  0x5a   :  { %v107_v2 = vld [vmem:[#allocation8 + $0x10] sm:$0xff]  ;;  %v1269_v3 = vpack.c.bf16 %v106_v1, %v105_v0  ;;  %v108_v4 = vld [vmem:[#allocation8 + $0x18] sm:$0xff]  ;;  %v1728_v5 = vld [vmem:[#allocation3] sm:$0xff]  ;;  %vm1570_vm1 = vmmov 0   ;;  %v1571_v17 = vmov 0.0   ;;  %v1572_v23 = vmov 1  }
  0x5b   :  { %v1273_v6 = vpack.c.bf16 %v108_v4, %v107_v2  ;;  %1235 = vmatprep.mubr.msk.f32.mxu0 %vm116_vm0, %v1728_v5  ;;  %v216_v7 = vld [vmem:[#allocation9] sm:$0xff]  ;;  %v217_v8 = vld [vmem:[#allocation9 + $0x8] sm:$0xff]  ;;  %v218_v9 = vld [vmem:[#allocation9 + $0x10] sm:$0xff]  ;;  %1322 = vset.pattern.permute.xlu1 %v1572_v23  ;;  %v1573_v24 = vmov 0   ;;  %v1574_v37 = vmov 10   ;;  %v1575_v38 = vmov 8  }
  0x5c   :  { %1270 = vmatprep.subr.bf16.mxu0 %v1269_v3  ;;  %v1277_v10 = vpack.c.bf16 %v217_v8, %v216_v7  ;;  %v219_v11 = vld [vmem:[#allocation9 + $0x18] sm:$0xff]  ;;  %v1732_v12 = vld [vmem:[#allocation6] sm:$0xff]  ;;  %v1736_v14 = vld [vmem:[#allocation3 + $0x8] sm:$0xff]  ;;  %1320 = vset.pattern.permute.xlu0 %v1573_v24  ;;  %v1576_v42 = vmov 3   ;;  %v1577_v43 = vmov 9   ;;  %v1578_v44 = vmov 11  }
  0x5d   :  { %1272 = vmatpush3.bf16.msra.mxu0 %v1269_v3  ;;  %v1281_v13 = vpack.c.bf16 %v219_v11, %v218_v9  ;;  %1246 = vmatprep.mubr.msk.f32.mxu1 %vm116_vm0, %v1732_v12  ;;  %v1740_v16 = vld [vmem:[#allocation6 + $0x8] sm:$0xff]  ;;  %v1286_v18 = vpack.c.bf16 %v1736_v14, %v1728_v5  ;;  %vm1746_vm2 = vmpackc.low %vm116_vm0, %vm116_vm0  ;;  %v319_v20 = vld [vmem:[#allocation11] sm:$0xff]  ;;  %v1579_v45 = vmov 2   ;;  %v1580_v48 = vmov 4   ;;  %s1588_s30 = smov [#allocation12]  }
  0x5e   :  { %1274 = vmatprep.subr.bf16.mxu0 %v1273_v6  ;;  %1278 = vmatprep.subr.bf16.mxu1 %v1277_v10  ;;  %v320_v21 = vld [vmem:[#allocation11 + $0x8] sm:$0xff]  ;;  %v321_v22 = vld [vmem:[#allocation11 + $0x10] sm:$0xff]  ;;  %v1581_v49 = vmov 12   ;;  %v1582_v51 = vmov 13   ;;  %v1583_v52 = vmov 5   ;;  %v1584_v54 = vmov 6  }
  0x5f   :  { %1280 = vmatpush3.bf16.msra.mxu1 %v1277_v10  ;;  %v1764_v26 = vld [vmem:[%s2210_s5] ss:$0 sm:$0xff]  ;;  %v1585_v55 = vmov 15   ;;  %v1586_v58 = vmov 14   ;;  %v1812_v60 = vshrl.u32 %v419_v56, 7  ;;  %v1587_v0 = vmov 7  }
  0x60   :  { %1282 = vmatprep.subr.bf16.mxu1 %v1281_v13  ;;  %v411_v50 = vld [vmem:[%s2211_s6] sm:$0xff]  ;;  %vm567_vm3 = vcmask 253952   ;;  %s1182_s11 = sshll.u32 %s1588_s30, 4  ;;  %vm1174_vm4 = vcmask 122880   ;;  %s1183_s11 = int_to_ptr.vmem [resolvable:$true] %s1182_s11 }
  0x61   :  { %1276 = vmatpush3.bf16.msra.mxu0 %v1273_v6  ;;  %v412_v53 = vmul.f32 1.442695, %v411_v50  ;;  %v1820_v1 = vsub.s32 7, %v1812_v60  ;;  %s1536_s13 = scalar_lea.vmem %s1183_s11, 32  ;;  %p1537_p13 = scmp.lt.s32.totalorder %s1183_s11, %s1183_s11 }
  0x62   :  { %1285 = vmatprep.subr.bf16.mxu0 %v1569_v15 }
  0x63   :  { %1284 = vmatpush3.bf16.msra.mxu1 %v1281_v13 }
  0x64   :  { %1236 = vmatmul.mubr.msk.f32.vlgmr.msra.gmra.mrb[0].mxu0 %vm116_vm0, %v1736_v14  ;;  %1289 = vmatprep.subr.bf16.mxu1 %v1569_v15 }
  0x65   :  { %1253 = vmatprep.mubr.msk.f32.mxu0 %vm1570_vm1, %v1571_v17 }
  0x66   :  { %1247 = vmatmul.mubr.msk.f32.vlgmr.msra.gmra.mrb[0].mxu1 %vm116_vm0, %v1740_v16 }
  0x67   :  { %1266 = vmatprep.mubr.msk.f32.mxu1 %vm1570_vm1, %v1571_v17 }
  0x6a   :  { %1288 = vmatpush3.bf16.xpose.msk.msra.mxu0 %vm1746_vm2, %v1286_v18 }
  0x71   :  { %1254 = vmatmul.mubr.msk.f32.vlgmr.msra.gmra.mrb[2].mxu0 %vm116_vm0, %v319_v20 }
  0x72   :  { %1256 = vmatprep.mubr.msk.f32.mxu0 %vm1570_vm1, %v1571_v17 }
  0x75   :  { %1257 = vmatmul.mubr.msk.f32.gmra.mrb[4].mxu0 %vm116_vm0, %v320_v21 }
  0x76   :  { %1259 = vmatprep.mubr.msk.f32.mxu0 %vm1570_vm1, %v1571_v17 }
  0x79   :  { %1260 = vmatmul.mubr.msk.f32.gmra.mrb[6].mxu0 %vm116_vm0, %v321_v22 }
 0x137   :  { %v1759_v25 = vpop.f32.mrb[0].mxu0 }
 0x138   :  { %v189_v27 = vpop.f32.mrb[1].mxu0  ;;  %v195_v6 = vadd.f32 %v1759_v25, %v1764_v26 }
 0x139   :  { %v1767_v28 = vadd.f32 %v1764_v26, %v189_v27  ;;  %v1774_v34 = vpop.f32.mrb[0].mxu1 }
 0x13a   :  { %v1778_v36 = vpop.f32.mrb[1].mxu1  ;;  %v201_v7 = vand.u32 2147483647, %v195_v6  ;;  %v1884_v13 = vadd.f32 %v1774_v34, %v1764_v26 }
 0x13b   :  { %v200_v29 = vand.u32 2147483647, %v1767_v28  ;;  %v198_v61 = vmax.f32 %v1767_v28, 0.0  ;;  %v1877_v10 = vadd.f32 %v1764_v26, %v1778_v36 }
 0x13c   :  { %v203_v8 = vsub.f32 0.0, %v201_v7  ;;  %v304_v17 = vand.u32 2147483647, %v1884_v13 }
 0x13d   :  { %v202_v30 = vsub.f32 0.0, %v200_v29  ;;  %v303_v11 = vand.u32 2147483647, %v1877_v10 }
 0x13e   :  { %v206_v9 = vmul.f32 1.442695, %v203_v8  ;;  %v306_v22 = vsub.f32 0.0, %v304_v17 }
 0x13f   :  { %v204_v33 = vmul.f32 1.442695, %v202_v30  ;;  %v305_v15 = vsub.f32 0.0, %v303_v11 }
 0x140   :  { %v309_v25 = vmul.f32 1.442695, %v306_v22 }
 0x141   :  { %1368 = vpow2.f32 %v204_v33  ;;  %v307_v20 = vmul.f32 1.442695, %v305_v15  ;;  %v1910_v33 = vsub.s32 0, %v1812_v60 }
 0x144   :  { %v1770_v31 = vpop.f32.mrb[2].mxu0 }
 0x145   :  { %574 = vperm.xlu1 %1322, %v1770_v31   ;;  %537 = vperm.xlu0 %1320, %v1770_v31   ;;  %v1255_v32 = vpop.f32.mrb[3].mxu0 }
 0x148   :  { %v1776_v35 = vpop.f32.mrb[4].mxu0 }
 0x149   :  { %1325 = vset.pattern.permute.xlu1 %v1574_v37  ;;  %1321 = vset.pattern.permute.xlu0 %v1575_v38  ;;  %v1258_v39 = vpop.f32.mrb[5].mxu0 }
 0x14a   :  { %880 = vperm.xlu1 %1325, %v1770_v31   ;;  %812 = vperm.xlu0 %1321, %v1770_v31  }
 0x14b   :  { %v1369_v46 = vpop.eup %1368 }
 0x14c   :  { %v1784_v40 = vpop.f32.mrb[6].mxu0  ;;  %v208_v47 = vadd.f32 1.0, %v1369_v46 }
 0x14d   :  { %v1261_v41 = vpop.f32.mrb[7].mxu0 }
 0x14e   :  { %1326 = vset.pattern.permute.xlu1 %v1576_v42  ;;  %1323 = vset.pattern.permute.xlu0 %v1577_v43  ;;  %1370 = vlog2.f32 %v208_v47 }
 0x14f   :  { %642 = vperm.xlu1 %1326, %v1770_v31   ;;  %846 = vperm.xlu0 %1323, %v1770_v31   ;;  %1372 = vpow2.f32 %v412_v53 }
 0x150   :  { %1374 = vpow2.f32 %v206_v9  ;;  %v302_v9 = vmax.f32 %v1884_v13, 0.0 }
 0x151   :  { %1376 = vpow2.f32 %v307_v20 }
 0x153   :  { %1327 = vset.pattern.permute.xlu1 %v1578_v44  ;;  %1324 = vset.pattern.permute.xlu0 %v1579_v45 }
 0x154   :  { %914 = vperm.xlu1 %1327, %v1770_v31   ;;  %608 = vperm.xlu0 %1324, %v1770_v31  }
 0x158   :  { %1328 = vset.pattern.permute.xlu1 %v1580_v48  ;;  %1329 = vset.pattern.permute.xlu0 %v1581_v49  ;;  %v1371_v57 = vpop.eup %1370 }
 0x159   :  { %676 = vperm.xlu1 %1328, %v1770_v31   ;;  %948 = vperm.xlu0 %1329, %v1770_v31   ;;  %v211_v59 = vmul.f32 0.6931472, %v1371_v57  ;;  %v1373_v62 = vpop.eup %1372 }
 0x15a   :  { %v1824_v2 = vsub.f32 0.0, %v1373_v62  ;;  %v1375_v18 = vpop.eup %1374 }
 0x15b   :  { %v1815_v63 = vadd.f32 %v211_v59, %v198_v61  ;;  %v209_v21 = vadd.f32 1.0, %v1375_v18  ;;  %v1377_v28 = vpop.eup %1376  ;;  %v1948_v59 = vsub.s32 2, %v1812_v60 }
 0x15c   :  { %v311_v32 = vadd.f32 1.0, %v1377_v28 }
 0x15d   :  { %1331 = vset.pattern.permute.xlu1 %v1582_v51  ;;  %1330 = vset.pattern.permute.xlu0 %v1583_v52  ;;  %v457_v3 = vrot.slane %v1815_v63, %v1820_v1  ;;  %1378 = vlog2.f32 %v209_v21  ;;  %v422_v39 = vrot.slane %v1815_v63, %v1910_v33  ;;  %v432_v11 = vrot.slane %v1815_v63, %v1948_v59 }
 0x15e   :  { %982 = vperm.xlu1 %1331, %v1770_v31   ;;  %710 = vperm.xlu0 %1330, %v1770_v31   ;;  %1380 = vpow2.f32 %v309_v25 }
 0x15f   :  { %v1833_v4 = vmul.f32 %v457_v3, %v1824_v2  ;;  %1382 = vlog2.f32 %v311_v32  ;;  %v423_v46 = vmul.f32 %v422_v39, %v1824_v2  ;;  %v1954_v3 = vmul.f32 %v1815_v63, %v1728_v5 }
 0x160   :  { %v433_v28 = vmul.f32 %v432_v11, %v1824_v2 }
 0x161   :  { %v776_v5 = vrot.slane %v1954_v3, %v1820_v1  ;;  %v534_v18 = vrot.slane %v1954_v3, %v1910_v33 }
 0x162   :  { %1332 = vset.pattern.permute.xlu1 %v1584_v54  ;;  %1335 = vset.pattern.permute.xlu0 %v1585_v55 }
 0x163   :  { %744 = vperm.xlu1 %1332, %v1770_v31   ;;  %1050 = vperm.xlu0 %1335, %v1770_v31  }
 0x167   :  { %1333 = vset.pattern.permute.xlu1 %v1586_v58  ;;  %1341 = vset.pattern.permute.xlu0 %v1574_v37 }
 0x168   :  { %1016 = vperm.xlu1 %1333, %v1770_v31   ;;  %889 = vperm.xlu0 %1341, %v1776_v35  }
 0x16c   :  { %1334 = vset.pattern.permute.xlu1 %v1587_v0  ;;  %1342 = vset.pattern.permute.xlu0 %v1576_v42 }
 0x16d   :  { %778 = vperm.xlu1 %1334, %v1770_v31   ;;  %651 = vperm.xlu0 %1342, %v1776_v35   ;;  %v1379_v31 = vpop.eup %1378 }
 0x16e   :  { %v213_v36 = vmul.f32 0.6931472, %v1379_v31 }
 0x171   :  { %1336 = vset.pattern.permute.xlu1 %v1573_v24  ;;  %1347 = vset.pattern.permute.xlu0 %v1582_v51 }
 0x172   :  { %991 = vperm.xlu0 %1347, %v1776_v35   ;;  %547 = vperm.xlu1 %1336, %v1776_v35  }
 0x176   :  { %1348 = vset.pattern.permute.xlu0 %v1584_v54  ;;  %1337 = vset.pattern.permute.xlu1 %v1575_v38 }
 0x177   :  { %753 = vperm.xlu0 %1348, %v1776_v35   ;;  %821 = vperm.xlu1 %1337, %v1776_v35  }
 0x17b   :  { %1352 = vset.pattern.permute.xlu0 %v1573_v24  ;;  %1338 = vset.pattern.permute.xlu1 %v1572_v23 }
 0x17c   :  { %583 = vperm.xlu1 %1338, %v1776_v35   ;;  %556 = vperm.xlu0 %1352, %v1784_v40  }
 0x180   :  { %1339 = vset.pattern.permute.xlu1 %v1577_v43  ;;  %1355 = vset.pattern.permute.xlu0 %v1576_v42 }
 0x181   :  { %855 = vperm.xlu1 %1339, %v1776_v35   ;;  %659 = vperm.xlu0 %1355, %v1784_v40  }
 0x185   :  { %1340 = vset.pattern.permute.xlu1 %v1579_v45  ;;  %1358 = vset.pattern.permute.xlu0 %v1584_v54  ;;  %v301_v54 = vmax.f32 %v1877_v10, 0.0 }
 0x186   :  { %617 = vperm.xlu1 %1340, %v1776_v35   ;;  %761 = vperm.xlu0 %1358, %v1784_v40  }
 0x18a   :  { %1343 = vset.pattern.permute.xlu1 %v1578_v44  ;;  %1361 = vset.pattern.permute.xlu0 %v1577_v43 }
 0x18b   :  { %923 = vperm.xlu1 %1343, %v1776_v35   ;;  %863 = vperm.xlu0 %1361, %v1784_v40  }
 0x18f   :  { %1344 = vset.pattern.permute.xlu1 %v1580_v48  ;;  %1364 = vset.pattern.permute.xlu0 %v1581_v49 }
 0x190   :  { %685 = vperm.xlu1 %1344, %v1776_v35   ;;  %965 = vperm.xlu0 %1364, %v1784_v40  }
 0x194   :  { %1345 = vset.pattern.permute.xlu1 %v1581_v49  ;;  %1367 = vset.pattern.permute.xlu0 %v1585_v55 }
 0x195   :  { %957 = vperm.xlu1 %1345, %v1776_v35   ;;  %1067 = vperm.xlu0 %1367, %v1784_v40  }
 0x199   :  { %1346 = vset.pattern.permute.xlu1 %v1583_v52 }
 0x19a   :  { %719 = vperm.xlu1 %1346, %v1776_v35  }
 0x19e   :  { %1349 = vset.pattern.permute.xlu1 %v1586_v58 }
 0x19f   :  { %1025 = vperm.xlu1 %1349, %v1776_v35  }
 0x1a3   :  { %1350 = vset.pattern.permute.xlu1 %v1587_v0 }
 0x1a4   :  { %787 = vperm.xlu1 %1350, %v1776_v35  }
 0x1a8   :  { %1351 = vset.pattern.permute.xlu1 %v1585_v55 }
 0x1a9   :  { %1059 = vperm.xlu1 %1351, %v1776_v35  }
 0x1ad   :  { %1353 = vset.pattern.permute.xlu1 %v1572_v23 }
 0x1ae   :  { %591 = vperm.xlu1 %1353, %v1784_v40  }
 0x1b2   :  { %1354 = vset.pattern.permute.xlu1 %v1579_v45  ;;  %v1928_v45 = vsub.s32 1, %v1812_v60 }
 0x1b3   :  { %625 = vperm.xlu1 %1354, %v1784_v40  }
 0x1b7   :  { %1356 = vset.pattern.permute.xlu1 %v1580_v48 }
 0x1b8   :  { %693 = vperm.xlu1 %1356, %v1784_v40  }
 0x1bc   :  { %1357 = vset.pattern.permute.xlu1 %v1583_v52  ;;  %v427_v52 = vrot.slane %v1815_v63, %v1928_v45 }
 0x1bd   :  { %727 = vperm.xlu1 %1357, %v1784_v40  }
 0x1be   :  { %v428_v57 = vmul.f32 %v427_v52, %v1824_v2 }
 0x1c0   :  { %v501_v8 = vmul.f32 1.442695, %v428_v57  ;;  %v572_v57 = vrot.slane %v1954_v3, %v1928_v45 }
 0x1c1   :  { %1359 = vset.pattern.permute.xlu1 %v1587_v0 }
 0x1c2   :  { %795 = vperm.xlu1 %1359, %v1784_v40  }
 0x1c4   :  { %v1891_v23 = vpop.permute.xlu1 %574  ;;  %v1893_v24 = vpop.permute.xlu0 %537 }
 0x1c5   :  { %v540_v31 = vmul.f32 %v1893_v24, %v534_v18 }
 0x1c6   :  { %1360 = vset.pattern.permute.xlu1 %v1575_v38  ;;  %v199_v38 = vmax.f32 %v195_v6, 0.0 }
 0x1c7   :  { %829 = vperm.xlu1 %1360, %v1784_v40  }
 0x1c8   :  { %v1920_v41 = vadd.f32 %v213_v36, %v199_v38  ;;  %v1986_v38 = vsub.s32 3, %v1812_v60 }
 0x1c9   :  { %v1897_v26 = vpop.permute.xlu1 %880  ;;  %v1899_v27 = vpop.permute.xlu0 %812 }
 0x1ca   :  { %v462_v47 = vrot.slane %v1920_v41, %v1910_v33  ;;  %v467_v0 = vrot.slane %v1920_v41, %v1928_v45  ;;  %v1975_v25 = vmul.f32 %v1920_v41, %v1736_v14 }
 0x1cb   :  { %1362 = vset.pattern.permute.xlu1 %v1574_v37  ;;  %v1381_v37 = vpop.eup %1380 }
 0x1cc   :  { %897 = vperm.xlu1 %1362, %v1784_v40   ;;  %v312_v42 = vadd.f32 1.0, %v1381_v37  ;;  %v1383_v50 = vpop.eup %1382  ;;  %v463_v53 = vmul.f32 %v462_v47, %v1824_v2  ;;  %v468_v17 = vmul.f32 %v467_v0, %v1824_v2  ;;  %v472_v37 = vrot.slane %v1920_v41, %v1948_v59 }
 0x1cd   :  { %v314_v55 = vmul.f32 0.6931472, %v1383_v50  ;;  %v503_v47 = vmul.f32 1.442695, %v433_v28 }
 0x1ce   :  { %v1903_v29 = vpop.permute.xlu1 %642  ;;  %v1905_v30 = vpop.permute.xlu0 %846  ;;  %1384 = vlog2.f32 %v312_v42  ;;  %v517_v36 = vmul.f32 1.442695, %v468_v17  ;;  %v810_v42 = vrot.slane %v1975_v25, %v1910_v33 }
 0x1cf   :  { %v317_v62 = vadd.f32 %v314_v55, %v301_v54 }
 0x1d0   :  { %1363 = vset.pattern.permute.xlu1 %v1578_v44  ;;  %v815_v54 = vmul.f32 %v1899_v27, %v810_v42  ;;  %v577_v27 = vmul.f32 %v1891_v23, %v572_v57 }
 0x1d1   :  { %931 = vperm.xlu1 %1363, %v1784_v40   ;;  %v1964_v15 = vmul.f32 %v317_v62, %v1732_v12 }
 0x1d3   :  { %v1912_v34 = vpop.permute.xlu1 %914  ;;  %v1914_v35 = vpop.permute.xlu0 %608  ;;  %v544_v32 = vrot.slane %v1964_v15, %v1910_v33 }
 0x1d5   :  { %1365 = vset.pattern.permute.xlu1 %v1582_v51  ;;  %v499_v51 = vmul.f32 1.442695, %v423_v46 }
 0x1d6   :  { %999 = vperm.xlu1 %1365, %v1784_v40  }
 0x1d7   :  { %1386 = vpow2.f32 %v499_v51 }
 0x1d8   :  { %v1922_v43 = vpop.permute.xlu1 %676  ;;  %v1924_v44 = vpop.permute.xlu0 %948 }
 0x1d9   :  { %v1385_v61 = vpop.eup %1384 }
 0x1da   :  { %1366 = vset.pattern.permute.xlu1 %v1586_v58  ;;  %v515_v58 = vmul.f32 1.442695, %v463_v53  ;;  %v316_v10 = vmul.f32 0.6931472, %v1385_v61  ;;  %v473_v53 = vmul.f32 %v472_v37, %v1824_v2  ;;  %v477_v61 = vrot.slane %v1920_v41, %v1986_v38 }
 0x1db   :  { %1033 = vperm.xlu1 %1366, %v1784_v40  }
 0x1dc   :  { %1388 = vpow2.f32 %v515_v58  ;;  %v318_v22 = vadd.f32 %v316_v10, %v302_v9  ;;  %v519_v11 = vmul.f32 1.442695, %v473_v53 }
 0x1dd   :  { %v1934_v48 = vpop.permute.xlu1 %982  ;;  %v1936_v49 = vpop.permute.xlu0 %710  ;;  %1390 = vpow2.f32 %v501_v8  ;;  %v2006_v8 = vsub.s32 4, %v1812_v60 }
 0x1de   :  { %v1989_v14 = vmul.f32 %v318_v22, %v1740_v16  ;;  %1392 = vpow2.f32 %v517_v36  ;;  %v437_v16 = vrot.slane %v1815_v63, %v1986_v38 }
 0x1df   :  { %1394 = vpow2.f32 %v503_v47  ;;  %v442_v23 = vrot.slane %v1815_v63, %v2006_v8 }
 0x1e0   :  { %v819_v55 = vrot.slane %v1989_v14, %v1910_v33  ;;  %v438_v18 = vmul.f32 %v437_v16, %v1824_v2  ;;  %1396 = vpow2.f32 %v519_v11  ;;  %v606_v16 = vrot.slane %v1954_v3, %v1948_v59 }
 0x1e1   :  { %v1387_v13 = vpop.eup %1386 }
 0x1e2   :  { %v1942_v56 = vpop.permute.xlu1 %744  ;;  %v1944_v40 = vpop.permute.xlu0 %1050  ;;  %v551_v39 = vmul.f32 0.0, %v1387_v13  ;;  %v478_v13 = vmul.f32 %v477_v61, %v1824_v2 }
 0x1e4   :  { %v552_v51 = vadd.f32 %v551_v39, %v540_v31  ;;  %v482_v31 = vrot.slane %v1920_v41, %v2006_v8  ;;  %v505_v39 = vmul.f32 1.442695, %v438_v18 }
 0x1e6   :  { %v1389_v50 = vpop.eup %1388  ;;  %1398 = vpow2.f32 %v505_v39 }
 0x1e7   :  { %v1956_v6 = vpop.permute.xlu1 %1016  ;;  %v1958_v7 = vpop.permute.xlu0 %889  ;;  %v825_v0 = vmul.f32 0.0, %v1389_v50 }
 0x1e8   :  { %v1391_v62 = vpop.eup %1390 }
 0x1e9   :  { %v826_v17 = vadd.f32 %v825_v0, %v815_v54  ;;  %v1393_v42 = vpop.eup %1392  ;;  %v853_v54 = vrot.slane %v1989_v14, %v1928_v45 }
 0x1ec   :  { %v779_v20 = vpop.permute.xlu1 %778  ;;  %v1971_v21 = vpop.permute.xlu0 %651 }
 0x1ed   :  { %v1977_v12 = vmul.f32 %v779_v20, %v776_v5  ;;  %v581_v20 = vrot.slane %v1964_v15, %v1928_v45 }
 0x1f1   :  { %v1993_v46 = vpop.permute.xlu0 %991  ;;  %v548_v24 = vpop.permute.xlu1 %547 }
 0x1f2   :  { %v550_v52 = vmul.f32 %v548_v24, %v544_v32  ;;  %v2022_v32 = vsub.s32 5, %v1812_v60  ;;  %v2025_v24 = vsub.s32 6, %v1812_v60  ;;  %v483_v60 = vmul.f32 %v482_v31, %v1824_v2 }
 0x1f4   :  { %v553_v58 = vadd.f32 %v552_v51, %v550_v52  ;;  %v521_v51 = vmul.f32 1.442695, %v478_v13  ;;  %v844_v52 = vrot.slane %v1975_v25, %v1928_v45  ;;  %v878_v45 = vrot.slane %v1975_v25, %v1948_v59 }
 0x1f5   :  { %v615_v13 = vrot.slane %v1964_v15, %v1948_v59 }
 0x1f6   :  { %v2009_v9 = vpop.permute.xlu0 %753  ;;  %v822_v33 = vpop.permute.xlu1 %821  ;;  %v587_v10 = vmul.f32 %v1391_v62, %v553_v58  ;;  %v849_v62 = vmul.f32 %v1905_v30, %v844_v52  ;;  %1400 = vpow2.f32 %v521_v51  ;;  %v883_v51 = vmul.f32 %v1897_v26, %v878_v45 }
 0x1f7   :  { %v824_v5 = vmul.f32 %v822_v33, %v819_v55  ;;  %v443_v55 = vmul.f32 %v442_v23, %v1824_v2  ;;  %v611_v33 = vmul.f32 %v1914_v35, %v606_v16  ;;  %v487_v23 = vrot.slane %v1920_v41, %v2022_v32 }
 0x1f8   :  { %v588_v22 = vadd.f32 %v587_v10, %v577_v27  ;;  %v447_v27 = vrot.slane %v1815_v63, %v2022_v32  ;;  %v887_v35 = vrot.slane %v1989_v14, %v1948_v59  ;;  %v912_v26 = vrot.slane %v1975_v25, %v1986_v38 }
 0x1f9   :  { %v2015_v28 = vadd.f32 %v826_v17, %v824_v5  ;;  %v507_v30 = vmul.f32 1.442695, %v443_v55  ;;  %v488_v16 = vmul.f32 %v487_v23, %v1824_v2 }
 0x1fa   :  { %v448_v39 = vmul.f32 %v447_v27, %v1824_v2  ;;  %v649_v27 = vrot.slane %v1964_v15, %v1986_v38 }
 0x1fb   :  { %v584_v36 = vpop.permute.xlu1 %583  ;;  %v557_v37 = vpop.permute.xlu0 %556  ;;  %v859_v53 = vmul.f32 %v1393_v42, %v2015_v28  ;;  %1402 = vpow2.f32 %v507_v30 }
 0x1fc   :  { %v586_v47 = vmul.f32 %v584_v36, %v581_v20  ;;  %v559_v50 = vmul.f32 %v557_v37, %v553_v58  ;;  %v1395_v58 = vpop.eup %1394 }
 0x1fd   :  { %v860_v18 = vadd.f32 %v859_v53, %v849_v62  ;;  %v1397_v42 = vpop.eup %1396 }
 0x1fe   :  { %v560_v57 = vsel %vm116_vm0, %v559_v50, 0.0  ;;  %v2037_v61 = vadd.f32 %v588_v22, %v586_v47  ;;  %v523_v22 = vmul.f32 1.442695, %v483_v60  ;;  %v640_v47 = vrot.slane %v1954_v3, %v1986_v38 }
 0x1ff   :  { %v561_v0 = vrot.slane %v560_v57, 4  ;;  %v492_v50 = vrot.slane %v1920_v41, %v2025_v24  ;;  %v892_v60 = vmul.f32 %v1958_v7, %v887_v35 }
 0x200   :  { %v856_v10 = vpop.permute.xlu1 %855  ;;  %v2045_v11 = vpop.permute.xlu0 %659  ;;  %v621_v17 = vmul.f32 %v1395_v58, %v2037_v61  ;;  %1404 = vpow2.f32 %v523_v22 }
 0x201   :  { %v562_v5 = vadd.f32 %v561_v0, %v560_v57  ;;  %v858_v20 = vmul.f32 %v856_v10, %v853_v54  ;;  %v452_v57 = vrot.slane %v1815_v63, %v2025_v24  ;;  %v509_v0 = vmul.f32 1.442695, %v448_v39 }
 0x202   :  { %v622_v31 = vadd.f32 %v621_v17, %v611_v33  ;;  %v1399_v33 = vpop.eup %1398  ;;  %v921_v63 = vrot.slane %v1989_v14, %v1986_v38  ;;  %v493_v7 = vmul.f32 %v492_v50, %v1824_v2  ;;  %v674_v38 = vrot.slane %v1954_v3, %v2006_v8 }
 0x203   :  { %v563_v36 = vrot.slane %v562_v5, 2  ;;  %v861_v37 = vadd.f32 %v860_v18, %v858_v20  ;;  %v645_v18 = vmul.f32 %v1903_v29, %v640_v47  ;;  %v453_v23 = vmul.f32 %v452_v57, %v1824_v2 }
 0x204   :  { %1406 = vpow2.f32 %v509_v0  ;;  %v654_v29 = vmul.f32 %v1971_v21, %v649_v27  ;;  %v683_v21 = vrot.slane %v1964_v15, %v2006_v8  ;;  %v708_v27 = vrot.slane %v1954_v3, %v2022_v32 }
 0x205   :  { %v564_v52 = vadd.f32 %v563_v36, %v562_v5  ;;  %v893_v53 = vmul.f32 %v1397_v42, %v861_v37  ;;  %v618_v54 = vpop.permute.xlu1 %617  ;;  %v2060_v55 = vpop.permute.xlu0 %761  ;;  %v511_v57 = vmul.f32 1.442695, %v453_v23 }
 0x206   :  { %v620_v59 = vmul.f32 %v618_v54, %v615_v13  ;;  %v1401_v5 = vpop.eup %1400  ;;  %v525_v13 = vmul.f32 1.442695, %v488_v16  ;;  %v527_v16 = vmul.f32 1.442695, %v493_v7 }
 0x207   :  { %v565_v58 = vrot.slane %v564_v52, 1  ;;  %v894_v62 = vadd.f32 %v893_v53, %v883_v51  ;;  %v497_v51 = vrot.slane %v1920_v41, %v1820_v1  ;;  %v1403_v53 = vpop.eup %1402 }
 0x208   :  { %v2070_v45 = vadd.f32 %v622_v31, %v620_v59  ;;  %v917_v31 = vmul.f32 %v1912_v34, %v912_v26  ;;  %v946_v34 = vrot.slane %v1975_v25, %v2006_v8  ;;  %1408 = vpow2.f32 %v525_v13 }
 0x209   :  { %v566_v10 = vadd.f32 %v565_v58, %v564_v52  ;;  %v2072_v17 = vadd.f32 %v894_v62, %v892_v60  ;;  %v679_v58 = vmul.f32 %v1922_v43, %v674_v38  ;;  %v955_v43 = vrot.slane %v1989_v14, %v2006_v8 }
 0x20a   :  { %v924_v20 = vpop.permute.xlu1 %923  ;;  %v864_v30 = vpop.permute.xlu0 %863  ;;  %v655_v22 = vmul.f32 %v1399_v33, %v2070_v45  ;;  %v951_v26 = vmul.f32 %v1924_v44, %v946_v34  ;;  %1410 = vpow2.f32 %v511_v57  ;;  %v717_v34 = vrot.slane %v1964_v15, %v2022_v32 }
 0x20b   :  { %568 = vst.msk [vmem:[#allocation2] sm:$0x1] %vm567_vm3, %v566_v10  ;;  %v927_v35 = vmul.f32 %v1401_v5, %v2072_v17  ;;  %v866_v36 = vmul.f32 %v864_v30, %v861_v37  ;;  %v926_v47 = vmul.f32 %v924_v20, %v921_v63  ;;  %v1405_v60 = vpop.eup %1404  ;;  %v498_v10 = vmul.f32 %v497_v51, %v1824_v2 }
 0x20c   :  { %v656_v39 = vadd.f32 %v655_v22, %v645_v18  ;;  %1412 = vpow2.f32 %v527_v16  ;;  %v513_v22 = vmul.f32 1.442695, %v1833_v4 }
 0x20d   :  { %v928_v42 = vadd.f32 %v927_v35, %v917_v31  ;;  %v867_v50 = vsel %vm116_vm0, %v866_v36, 0.0  ;;  %v713_v35 = vmul.f32 %v1936_v49, %v708_v27  ;;  %v1014_v27 = vrot.slane %v1975_v25, %v2025_v24 }
 0x20e   :  { %v868_v52 = vrot.slane %v867_v50, 4  ;;  %v657_v37 = vadd.f32 %v656_v39, %v654_v29  ;;  %v1407_v23 = vpop.eup %1406  ;;  %v529_v29 = vmul.f32 1.442695, %v498_v10  ;;  %v980_v39 = vrot.slane %v1975_v25, %v2022_v32 }
 0x20f   :  { %v2091_v54 = vadd.f32 %v928_v42, %v926_v47  ;;  %v686_v59 = vpop.permute.xlu1 %685  ;;  %v966_v38 = vpop.permute.xlu0 %965  ;;  %v989_v42 = vrot.slane %v1989_v14, %v2022_v32  ;;  %1414 = vpow2.f32 %v513_v22  ;;  %v742_v32 = vrot.slane %v1954_v3, %v2025_v24 }
 0x210   :  { %v869_v62 = vadd.f32 %v868_v52, %v867_v50  ;;  %v662_v41 = vmul.f32 %v2045_v11, %v657_v37  ;;  %v689_v0 = vmul.f32 %v1403_v53, %v657_v37  ;;  %v688_v5 = vmul.f32 %v686_v59, %v683_v21 }
 0x211   :  { %v961_v33 = vmul.f32 %v1405_v60, %v2091_v54  ;;  %v985_v49 = vmul.f32 %v1934_v48, %v980_v39  ;;  %1416 = vpow2.f32 %v529_v29  ;;  %v994_v57 = vmul.f32 %v1993_v46, %v989_v42 }
 0x212   :  { %v870_v63 = vrot.slane %v869_v62, 2  ;;  %v663_v7 = vsel %vm116_vm0, %v662_v41, 0.0  ;;  %v690_v18 = vadd.f32 %v689_v0, %v679_v58  ;;  %v1409_v51 = vpop.eup %1408  ;;  %v751_v48 = vrot.slane %v1964_v15, %v2025_v24 }
 0x213   :  { %v962_v20 = vadd.f32 %v961_v33, %v951_v26  ;;  %v664_v11 = vrot.slane %v663_v7, 4  ;;  %v785_v29 = vrot.slane %v1964_v15, %v1820_v1 }
 0x214   :  { %v871_v30 = vadd.f32 %v870_v63, %v869_v62  ;;  %v958_v44 = vpop.permute.xlu1 %957  ;;  %v2105_v13 = vadd.f32 %v690_v18, %v688_v5  ;;  %v1411_v26 = vpop.eup %1410  ;;  %v747_v63 = vmul.f32 %v1942_v56, %v742_v32  ;;  %v1019_v18 = vmul.f32 %v1956_v6, %v1014_v27 }
 0x215   :  { %v960_v2 = vmul.f32 %v958_v44, %v955_v43  ;;  %v665_v31 = vadd.f32 %v664_v11, %v663_v7  ;;  %v1023_v43 = vrot.slane %v1989_v14, %v2025_v24  ;;  %v756_v11 = vmul.f32 %v2009_v9, %v751_v48 }
 0x216   :  { %v872_v36 = vrot.slane %v871_v30, 1  ;;  %v723_v8 = vmul.f32 %v1407_v23, %v2105_v13  ;;  %v1413_v10 = vpop.eup %1412 }
 0x217   :  { %v963_v47 = vadd.f32 %v962_v20, %v960_v2  ;;  %v666_v50 = vrot.slane %v665_v31, 2 }
 0x218   :  { %v873_v4 = vadd.f32 %v872_v36, %v871_v30  ;;  %v724_v52 = vadd.f32 %v723_v8, %v713_v35  ;;  %v1048_v35 = vrot.slane %v1975_v25, %v1820_v1 }
 0x219   :  { %v995_v37 = vmul.f32 %v1409_v51, %v963_v47  ;;  %v968_v53 = vmul.f32 %v966_v38, %v963_v47  ;;  %v720_v21 = vpop.permute.xlu1 %719  ;;  %v667_v59 = vadd.f32 %v666_v50, %v665_v31  ;;  %v1415_v56 = vpop.eup %1414 }
 0x21a   :  { %874 = vst.msk [vmem:[#allocation2 + $0x9] sm:$0x1] %vm567_vm3, %v873_v4  ;;  %v722_v16 = vmul.f32 %v720_v21, %v717_v34  ;;  %v1053_v39 = vmul.f32 %v1944_v40, %v1048_v35  ;;  %v1057_v4 = vrot.slane %v1989_v14, %v1820_v1  ;;  %v1068_v40 = vpop.permute.xlu0 %1067 }
 0x21b   :  { %v996_v60 = vadd.f32 %v995_v37, %v985_v49  ;;  %v969_v58 = vsel %vm116_vm0, %v968_v53, 0.0  ;;  %v668_v62 = vrot.slane %v667_v59, 1  ;;  %v1417_v24 = vpop.eup %1416 }
 0x21c   :  { %v970_v41 = vrot.slane %v969_v58, 4  ;;  %v2124_v0 = vadd.f32 %v724_v52, %v722_v16 }
 0x21d   :  { %v2128_v33 = vadd.f32 %v996_v60, %v994_v57  ;;  %v669_v46 = vadd.f32 %v668_v62, %v667_v59 }
 0x21e   :  { %v971_v5 = vadd.f32 %v970_v41, %v969_v58  ;;  %v1026_v7 = vpop.permute.xlu1 %1025  ;;  %v757_v3 = vmul.f32 %v1411_v26, %v2124_v0 }
 0x21f   :  { %v1029_v20 = vmul.f32 %v1413_v10, %v2128_v33  ;;  %670 = vst.msk [vmem:[#allocation2 + $0x3] sm:$0x1] %vm567_vm3, %v669_v46  ;;  %v1028_v23 = vmul.f32 %v1026_v7, %v1023_v43 }
 0x220   :  { %v972_v30 = vrot.slane %v971_v5, 2  ;;  %v758_v44 = vadd.f32 %v757_v3, %v747_v63 }
 0x221   :  { %v1030_v22 = vadd.f32 %v1029_v20, %v1019_v18 }
 0x222   :  { %v973_v2 = vadd.f32 %v972_v30, %v971_v5  ;;  %v759_v31 = vadd.f32 %v758_v44, %v756_v11 }
 0x223   :  { %v2140_v6 = vadd.f32 %v1030_v22, %v1028_v23  ;;  %v788_v36 = vpop.permute.xlu1 %787 }
 0x224   :  { %v974_v38 = vrot.slane %v973_v2, 1  ;;  %v764_v9 = vmul.f32 %v2060_v55, %v759_v31  ;;  %v791_v8 = vmul.f32 %v1415_v56, %v759_v31  ;;  %v790_v50 = vmul.f32 %v788_v36, %v785_v29 }
 0x225   :  { %v1063_v42 = vmul.f32 %v1417_v24, %v2140_v6 }
 0x226   :  { %v975_v47 = vadd.f32 %v974_v38, %v973_v2  ;;  %v765_v51 = vsel %vm116_vm0, %v764_v9, 0.0  ;;  %v792_v25 = vadd.f32 %v791_v8, %v1977_v12 }
 0x227   :  { %v1064_v34 = vadd.f32 %v1063_v42, %v1053_v39  ;;  %v766_v52 = vrot.slane %v765_v51, 4 }
 0x228   :  { %976 = vst.msk [vmem:[#allocation2 + $0xc] sm:$0x1] %vm567_vm3, %v975_v47  ;;  %v1060_v15 = vpop.permute.xlu1 %1059  ;;  %v793_v55 = vadd.f32 %v792_v25, %v790_v50 }
 0x229   :  { %v1062_v49 = vmul.f32 %v1060_v15, %v1057_v4  ;;  %v767_v37 = vadd.f32 %v766_v52, %v765_v51 }
 0x22b   :  { %v1065_v53 = vadd.f32 %v1064_v34, %v1062_v49  ;;  %v768_v21 = vrot.slane %v767_v37, 2 }
 0x22d   :  { %v1070_v59 = vmul.f32 %v1068_v40, %v1065_v53  ;;  %v592_v16 = vpop.permute.xlu1 %591  ;;  %v769_v57 = vadd.f32 %v768_v21, %v767_v37 }
 0x22e   :  { %v594_v60 = vmul.f32 %v592_v16, %v2037_v61 }
 0x22f   :  { %v1071_v12 = vsel %vm116_vm0, %v1070_v59, 0.0  ;;  %v770_v58 = vrot.slane %v769_v57, 1 }
 0x230   :  { %v1072_v1 = vrot.slane %v1071_v12, 4  ;;  %v595_v14 = vsel %vm116_vm0, %v594_v60, 0.0 }
 0x231   :  { %v596_v62 = vrot.slane %v595_v14, 4  ;;  %v771_v32 = vadd.f32 %v770_v58, %v769_v57 }
 0x232   :  { %v1073_v48 = vadd.f32 %v1072_v1, %v1071_v12  ;;  %v626_v41 = vpop.permute.xlu1 %625 }
 0x233   :  { %v597_v26 = vadd.f32 %v596_v62, %v595_v14  ;;  %v628_v27 = vmul.f32 %v626_v41, %v2070_v45  ;;  %772 = vst.msk [vmem:[#allocation2 + $0x6] sm:$0x1] %vm567_vm3, %v771_v32 }
 0x234   :  { %v1074_v46 = vrot.slane %v1073_v48, 2 }
 0x235   :  { %v598_v10 = vrot.slane %v597_v26, 2  ;;  %v629_v63 = vsel %vm116_vm0, %v628_v27, 0.0 }
 0x236   :  { %v1075_v61 = vadd.f32 %v1074_v46, %v1073_v48  ;;  %v630_v5 = vrot.slane %v629_v63, 4 }
 0x237   :  { %v599_v7 = vadd.f32 %v598_v10, %v597_v26  ;;  %v694_v3 = vpop.permute.xlu1 %693 }
 0x238   :  { %v1076_v18 = vrot.slane %v1075_v61, 1  ;;  %v631_v43 = vadd.f32 %v630_v5, %v629_v63  ;;  %v696_v20 = vmul.f32 %v694_v3, %v2105_v13 }
 0x239   :  { %v600_v11 = vrot.slane %v599_v7, 1 }
 0x23a   :  { %v1077_v30 = vadd.f32 %v1076_v18, %v1075_v61  ;;  %v632_v44 = vrot.slane %v631_v43, 2  ;;  %v697_v22 = vsel %vm116_vm0, %v696_v20, 0.0 }
 0x23b   :  { %v601_v45 = vadd.f32 %v600_v11, %v599_v7  ;;  %v698_v23 = vrot.slane %v697_v22, 4 }
 0x23c   :  { %1078 = vst.msk [vmem:[#allocation2 + $0xf] sm:$0x1] %vm567_vm3, %v1077_v30  ;;  %v633_v56 = vadd.f32 %v632_v44, %v631_v43  ;;  %v728_v2 = vpop.permute.xlu1 %727 }
 0x23d   :  { %602 = vst.msk [vmem:[#allocation2 + $0x1] sm:$0x1] %vm567_vm3, %v601_v45  ;;  %v699_v31 = vadd.f32 %v698_v23, %v697_v22  ;;  %v730_v35 = vmul.f32 %v728_v2, %v2124_v0 }
 0x23e   :  { %v634_v36 = vrot.slane %v633_v56, 1 }
 0x23f   :  { %v700_v24 = vrot.slane %v699_v31, 2  ;;  %v731_v13 = vsel %vm116_vm0, %v730_v35, 0.0 }
 0x240   :  { %v635_v38 = vadd.f32 %v634_v36, %v633_v56  ;;  %v732_v29 = vrot.slane %v731_v13, 4 }
 0x241   :  { %v701_v9 = vadd.f32 %v700_v24, %v699_v31  ;;  %v796_v8 = vpop.permute.xlu1 %795 }
 0x242   :  { %636 = vst.msk [vmem:[#allocation2 + $0x2] sm:$0x1] %vm567_vm3, %v635_v38  ;;  %v733_v39 = vadd.f32 %v732_v29, %v731_v13  ;;  %v798_v42 = vmul.f32 %v796_v8, %v793_v55 }
 0x243   :  { %v702_v47 = vrot.slane %v701_v9, 1 }
 0x244   :  { %v734_v50 = vrot.slane %v733_v39, 2  ;;  %v799_v51 = vsel %vm116_vm0, %v798_v42, 0.0  ;;  %v1421_v42 = vld [vmem:[#allocation6 + $0x8] sm:$0xff] }
 0x245   :  { %v703_v25 = vadd.f32 %v702_v47, %v701_v9  ;;  %v800_v4 = vrot.slane %v799_v51, 4  ;;  %v1418_v9 = vld [vmem:[#allocation3] sm:$0xff] }
 0x246   :  { %v735_v34 = vadd.f32 %v734_v50, %v733_v39  ;;  %v830_v0 = vpop.permute.xlu1 %829  ;;  %v1420_v39 = vld [vmem:[#allocation3 + $0x8] sm:$0xff]  ;;  %v1203_v50 = vld [vmem:[%s2212_s7] ss:$0 sm:$0xff]  ;;  %s1532_s7 = scalar_lea.vmem %s1183_s11, 16 }
 0x247   :  { %704 = vst.msk [vmem:[#allocation2 + $0x4] sm:$0x1] %vm567_vm3, %v703_v25  ;;  %v801_v52 = vadd.f32 %v800_v4, %v799_v51  ;;  %v832_v15 = vmul.f32 %v830_v0, %v2015_v28  ;;  %v1082_v47 = vadd.f32 %v1421_v42, %v1420_v39  ;;  %p1533_p12 = scmp.ne.s32.totalorder %s1183_s11, %s1532_s7  ;;  %p1538_p0 = scmp.lt.s32.totalorder %s1536_s13, %s1532_s7 }
 0x248   :  { %v736_v49 = vrot.slane %v735_v34, 1 }
 0x249   :  { %v802_v37 = vrot.slane %v801_v52, 2  ;;  %v833_v40 = vsel %vm116_vm0, %v832_v15, 0.0  ;;  %v1091_v25 = vmul.f32 %v1203_v50, %v1082_v47  ;;  %p1539_p1 = por %p1538_p0, %p1537_p13 }
 0x24a   :  { %v737_v53 = vadd.f32 %v736_v49, %v735_v34  ;;  %v834_v21 = vrot.slane %v833_v40, 4  ;;  %v1094_v49 = vld [vmem:[%s2213_s8] sm:$0x1] }
 0x24b   :  { %v803_v55 = vadd.f32 %v802_v37, %v801_v52  ;;  %v898_v59 = vpop.permute.xlu1 %897  ;;  %p1540_p2 = pnand %p1539_p1, %p1533_p12 }
 0x24c   :  { %738 = vst.msk [vmem:[#allocation2 + $0x5] sm:$0x1] %vm567_vm3, %v737_v53  ;;  %v835_v16 = vadd.f32 %v834_v21, %v833_v40  ;;  %v900_v57 = vmul.f32 %v898_v59, %v2072_v17 }
 0x24d   :  { %v804_v60 = vrot.slane %v803_v55, 1 }
 0x24e   :  { %v836_v12 = vrot.slane %v835_v16, 2  ;;  %v901_v58 = vsel %vm116_vm0, %v900_v57, 0.0 }
 0x24f   :  { %v805_v1 = vadd.f32 %v804_v60, %v803_v55  ;;  %v902_v14 = vrot.slane %v901_v58, 4 }
 0x250   :  { %v837_v28 = vadd.f32 %v836_v12, %v835_v16  ;;  %v932_v62 = vpop.permute.xlu1 %931 }
 0x251   :  { %806 = vst.msk [vmem:[#allocation2 + $0x7] sm:$0x1] %vm567_vm3, %v805_v1  ;;  %v903_v32 = vadd.f32 %v902_v14, %v901_v58  ;;  %v934_v48 = vmul.f32 %v932_v62, %v2091_v54 }
 0x252   :  { %v838_v41 = vrot.slane %v837_v28, 1 }
 0x253   :  { %v904_v26 = vrot.slane %v903_v32, 2  ;;  %v935_v27 = vsel %vm116_vm0, %v934_v48, 0.0 }
 0x254   :  { %v839_v46 = vadd.f32 %v838_v41, %v837_v28  ;;  %v936_v10 = vrot.slane %v935_v27, 4 }
 0x255   :  { %v905_v17 = vadd.f32 %v904_v26, %v903_v32  ;;  %v1000_v63 = vpop.permute.xlu1 %999 }
 0x256   :  { %840 = vst.msk [vmem:[#allocation2 + $0x8] sm:$0x1] %vm567_vm3, %v839_v46  ;;  %v937_v61 = vadd.f32 %v936_v10, %v935_v27  ;;  %v1002_v5 = vmul.f32 %v1000_v63, %v2128_v33 }
 0x257   :  { %v906_v7 = vrot.slane %v905_v17, 1 }
 0x258   :  { %v938_v3 = vrot.slane %v937_v61, 2  ;;  %v1003_v18 = vsel %vm116_vm0, %v1002_v5, 0.0  ;;  %v1079_v4 = vld [vmem:[#allocation2] sm:$0xff] }
 0x259   :  { %v907_v43 = vadd.f32 %v906_v7, %v905_v17  ;;  %v1004_v20 = vrot.slane %v1003_v18, 4 }
 0x25a   :  { %v939_v54 = vadd.f32 %v938_v3, %v937_v61  ;;  %v1034_v11 = vpop.permute.xlu1 %1033 }
 0x25b   :  { %908 = vst.msk [vmem:[#allocation2 + $0xa] sm:$0x1] %vm567_vm3, %v907_v43  ;;  %v1005_v30 = vadd.f32 %v1004_v20, %v1003_v18  ;;  %v1036_v44 = vmul.f32 %v1034_v11, %v2140_v6  ;;  %v1419_v6 = vld [vmem:[#allocation6] sm:$0xff] }
 0x25c   :  { %v940_v22 = vrot.slane %v939_v54, 1  ;;  %v1081_v8 = vadd.f32 %v1419_v6, %v1418_v9 }
 0x25d   :  { %v1006_v45 = vrot.slane %v1005_v30, 2  ;;  %v1037_v23 = vsel %vm116_vm0, %v1036_v44, 0.0 }
 0x25e   :  { %v941_v56 = vadd.f32 %v940_v22, %v939_v54  ;;  %v1038_v2 = vrot.slane %v1037_v23, 4  ;;  %v1090_v51 = vmul.f32 %v1203_v50, %v1081_v8 }
 0x25f   :  { %v1007_v33 = vadd.f32 %v1006_v45, %v1005_v30 }
 0x260   :  { %942 = vst.msk [vmem:[#allocation2 + $0xb] sm:$0x1] %vm567_vm3, %v941_v56  ;;  %v1039_v31 = vadd.f32 %v1038_v2, %v1037_v23  ;;  %v1092_v0 = vadd.f32 %v1090_v51, %v1079_v4 }
 0x261   :  { %v1008_v35 = vrot.slane %v1007_v33, 1 }
 0x262   :  { %v1040_v36 = vrot.slane %v1039_v31, 2 }
 0x263   :  { %v1009_v24 = vadd.f32 %v1008_v35, %v1007_v33 }
 0x264   :  { %v1041_v13 = vadd.f32 %v1040_v36, %v1039_v31 }
 0x265   :  { %1010 = vst.msk [vmem:[#allocation2 + $0xd] sm:$0x1] %vm567_vm3, %v1009_v24 }
 0x266   :  { %v1042_v38 = vrot.slane %v1041_v13, 1 }
 0x268   :  { %v1043_v29 = vadd.f32 %v1042_v38, %v1041_v13 }
 0x26a   :  { %1044 = vst.msk [vmem:[#allocation2 + $0xe] sm:$0x1] %vm567_vm3, %v1043_v29 }
 0x271   :  { %v1080_v34 = vld [vmem:[#allocation2 + $0x8] sm:$0xff] }
 0x272   :  { %v1093_v52 = vadd.f32 %v1091_v25, %v1080_v34 }
 0x274   :  { %v1290_v15 = vpack.c.bf16 %v1093_v52, %v1092_v0 }
 0x276   :  { %1292 = vmatpush3.bf16.xpose.msk.msra.mxu1 %vm1746_vm2, %v1290_v15 }
 0x27d   :  { %1267 = vmatmul.mubr.msk.f32.vlgmr.msra.gmra.mrb[2].mxu1 %vm116_vm0, %v1094_v49 }
 0x350   :  { %v1170_v37 = vpop.f32.mrb[2].mxu1 }
 0x351   :  { %v1268_v40 = vpop.f32.mrb[3].mxu1  ;;  %1175 = vst.msk [vmem:[#allocation12] sm:$0x1] %vm1174_vm4, %v1170_v37 }
 0x352   :  { %1543 = shalt.err (!%p1540_p2)
}
 0x353   :  { %s1544_s8 = scalar_lea.hbm %s2214_s9, 16 }
 0x354   :  { %p1545_p3 = scmp.ne.s32.totalorder %s2214_s9, %s1544_s8  ;;  %p1548_p4 = scmp.lt.u32.totalorder %s1544_s8, %s2214_s9 }
 0x356   :  { %p1550_p5 = pnand %p1548_p4, %p1545_p3 }
 0x358   :  { %1553 = shalt.err (!%p1550_p5)
}
 0x359   :  { %1185 = dma.vmem_to_hbm [thread:$0]  %s1183_s11, 16, %s2214_s9, [#allocation5]  }
 0x35a   :  { %1560 = dma.done.wait [#allocation5], 16  }
 0x35b   :  { %1561 = vsyncadd [#allocation5], 4294967280 }
 0x35c   :  { %1189 = vsyncpa [#allocation4], 1 }
 0x35d   :  { %1190 = vsyncpa [#allocation7], 1 }
 0x35e   :  { %1191 = vsyncpa [#allocation10], 1 }
 0x35f   :  { %1192 = vsyncpa [#allocation5], 1 }

</bundles_post_ra>
